<compile_context>
chip_gen: v7x
topology: tpu7x:2x2x1
jax: 0.10.0
libtpu: 0.0.40
codegen_flags: <defaults>
</compile_context>

<pallas_src>
import functools
import math

import jax
import jax.numpy as jnp
from jax.experimental import pallas as pl
from jax.experimental.pallas import tpu as pltpu


def _layer_norm_torch_style(x, alpha, bias, eps, d):
    # Matches Norm.forward: (x - mean) / (std + eps); torch.std is unbiased (N-1).
    m = jnp.mean(x, axis=-1, keepdims=True)
    var = jnp.sum((x - m) ** 2, axis=-1, keepdims=True) * (1.0 / (d - 1))
    std = jnp.sqrt(var)
    inv = pl.reciprocal(std + eps, approx=True)
    return alpha * ((x - m) * inv) + bias


def encoder_kernel(xq_ref, xf_ref,
                   wq_ref, bq_ref, wkv_ref, bkv_ref, wo_ref, bo_ref,
                   w1_ref, b1_ref, w2_ref, b2_ref,
                   a1_ref, g1_ref, a2_ref, g2_ref,
                   o_ref, s_ref,
                   k_scr, v_scr, val_scr,
                   *, num_head, eps):
    qi = pl.program_id(1)
    TQ, D = xq_ref.shape[1], xq_ref.shape[2]
    d_k = D // num_head
    inv_sqrt_dk = 1.0 / math.sqrt(d_k)
    cdt = jnp.bfloat16

    # ---- fused K/V projection for the full sequence, once per batch row ----
    @pl.when(qi == 0)
    def _():
        xf = xf_ref[0].astype(cdt)                                     # (T, D)
        kv = jnp.dot(xf, wkv_ref[...],
                     preferred_element_type=jnp.float32) + bkv_ref[0]  # (T, 2D) f32
        k_scr[...] = kv[:, :D].astype(cdt)
        v_scr[...] = kv[:, D:].astype(cdt)

    xq = xq_ref[0]                                                     # (TQ, D) f32
    q = jnp.dot(xq.astype(cdt), wq_ref[...],
                preferred_element_type=jnp.float32) + bq_ref[0]        # (TQ, D) f32

    k_all = k_scr[...]                                                 # (T, D) bf16
    v_all = v_scr[...]                                                 # (T, D) bf16

    # Per-head scores + softmax; attention values packed on the lane axis in VMEM
    # scratch so the output projection below is a single K=D matmul.
    for h in range(num_head):
        lo = h * d_k
        qh = q[:, lo:lo + d_k].astype(cdt)                             # (TQ, d_k)
        kh = k_all[:, lo:lo + d_k]                                     # (T,  d_k)
        vh = v_all[:, lo:lo + d_k]                                     # (T,  d_k)
        s = jnp.einsum("qd,kd->qk", qh, kh,
                       preferred_element_type=jnp.float32) * inv_sqrt_dk
        s = jnp.maximum(s, -6000.0)                                    # clamp_min
        s = s - jnp.max(s, axis=-1, keepdims=True)
        e = jnp.exp(s)
        p = e * pl.reciprocal(jnp.sum(e, axis=-1, keepdims=True), approx=True)
        # TODO(synk): attention-prob / residual dropout omitted (inference mode).
        s_ref[0, h] = p                                                # (TQ, T) f32
        val_scr[:, lo:lo + d_k] = jnp.dot(p.astype(cdt), vh,
                                          preferred_element_type=jnp.float32)

    # Single full-K output projection.
    attn_out = jnp.dot(val_scr[...].astype(cdt), wo_ref[...],
                       preferred_element_type=jnp.float32) + bo_ref[0]

    # Residual + norm1
    x1 = xq + attn_out
    xn1 = _layer_norm_torch_style(x1, a1_ref[0], g1_ref[0], eps, D)

    # FeedForward: relu(linear1) -> linear2
    hdn = jnp.maximum(
        jnp.dot(xn1.astype(cdt), w1_ref[...],
                preferred_element_type=jnp.float32) + b1_ref[0], 0.0)
    ff = jnp.dot(hdn.astype(cdt), w2_ref[...],
                 preferred_element_type=jnp.float32) + b2_ref[0]

    # Residual + norm2
    x2 = xn1 + ff
    out = _layer_norm_torch_style(x2, a2_ref[0], g2_ref[0], eps, D)

    o_ref[0] = out.astype(o_ref.dtype)


def transformer_encode_layer(x, x_mask, params, *, num_head, eps=1e-6, block_q=128):
    del x_mask  # unused, as in the PyTorch forward (attn called with mask=None)
    B, T, D = x.shape
    FF = params["w1"].shape[1]
    H = num_head

    TQ = min(block_q, T)
    # TODO(synk): pad T to a multiple of the query tile for general sequence lengths.
    assert T % TQ == 0 and (TQ == T or TQ % 8 == 0)
    nq = T // TQ

    # Host-side weight prep: fuse K|V, cast matmul weights to bf16 (biases stay f32).
    cdt = jnp.bfloat16
    wq = params["wq"].astype(cdt)
    wkv = jnp.concatenate([params["wk"], params["wv"]], axis=1).astype(cdt)  # (D, 2D)
    bkv = jnp.concatenate([params["bk"], params["bv"]], axis=1)              # (1, 2D)
    wo = params["wo"].astype(cdt)
    w1 = params["w1"].astype(cdt)
    w2 = params["w2"].astype(cdt)

    kernel = functools.partial(encoder_kernel, num_head=H, eps=eps)

    def full(shape):
        return pl.BlockSpec(shape, lambda b, qi: (0,) * len(shape))

    in_specs = [
        pl.BlockSpec((1, TQ, D), lambda b, qi: (b, qi, 0)),   # x (query tile)
        pl.BlockSpec((1, T, D), lambda b, qi: (b, 0, 0)),     # x (full, for K/V)
        full((D, D)), full((1, D)),                           # Wq, bq
        full((D, 2 * D)), full((1, 2 * D)),                   # Wk|Wv, bk|bv
        full((D, D)), full((1, D)),                           # Wo, bo
        full((D, FF)), full((1, FF)),                         # W1, b1
        full((FF, D)), full((1, D)),                          # W2, b2
        full((1, D)), full((1, D)),                           # norm1 alpha, bias
        full((1, D)), full((1, D)),                           # norm2 alpha, bias
    ]
    out_specs = (
        pl.BlockSpec((1, TQ, D), lambda b, qi: (b, qi, 0)),
        pl.BlockSpec((1, H, TQ, T), lambda b, qi: (b, 0, qi, 0)),
    )
    out_shape = (
        jax.ShapeDtypeStruct((B, T, D), x.dtype),
        jax.ShapeDtypeStruct((B, H, T, T), jnp.float32),
    )
    scratch_shapes = [
        pltpu.VMEM((T, D), jnp.bfloat16),     # K for the current batch row
        pltpu.VMEM((T, D), jnp.bfloat16),     # V for the current batch row
        pltpu.VMEM((TQ, D), jnp.float32),     # packed per-head attention values
    ]

    return pl.pallas_call(
        kernel,
        out_shape=out_shape,
        grid_spec=pltpu.PrefetchScalarGridSpec(
            num_scalar_prefetch=0,
            grid=(B, nq),
            in_specs=in_specs,
            out_specs=out_specs,
            scratch_shapes=scratch_shapes,
        ),
        compiler_params=pltpu.CompilerParams(
            dimension_semantics=("parallel", "arbitrary"),
            vmem_limit_bytes=48 * 1024 * 1024,
        ),
    )(x, x,
      wq, params["bq"], wkv, bkv, wo, params["bo"],
      w1, params["b1"], w2, params["b2"],
      params["a1"], params["g1"], params["a2"], params["g2"])


# ---------------- pure-JAX reference (mirrors the PyTorch module, f32) ----------------
def reference(x, params, num_head, eps=1e-6):
    B, T, D = x.shape
    d_k = D // num_head

    def lin(v, w, b):
        return v @ w + b[0]

    def norm(v, a, g):
        m = jnp.mean(v, axis=-1, keepdims=True)
        std = jnp.sqrt(jnp.sum((v - m) ** 2, axis=-1, keepdims=True) / (D - 1))
        return a[0] * ((v - m) / (std + eps)) + g[0]

    q = lin(x, params["wq"], params["bq"]).reshape(B, T, num_head, d_k).transpose(0, 2, 1, 3)
    k = lin(x, params["wk"], params["bk"]).reshape(B, T, num_head, d_k).transpose(0, 2, 1, 3)
    v = lin(x, params["wv"], params["bv"]).reshape(B, T, num_head, d_k).transpose(0, 2, 1, 3)
    s = jnp.einsum("bhtd,bhsd->bhts", q, k) / math.sqrt(d_k)
    s = jnp.maximum(s, -6000.0)
    p = jax.nn.softmax(s, axis=-1)
    val = jnp.einsum("bhts,bhsd->bhtd", p, v).transpose(0, 2, 1, 3).reshape(B, T, D)
    attn_out = lin(val, params["wo"], params["bo"])
    xn1 = norm(x + attn_out, params["a1"], params["g1"])
    ff = lin(jnp.maximum(lin(xn1, params["w1"], params["b1"]), 0.0), params["w2"], params["b2"])
    out = norm(xn1 + ff, params["a2"], params["g2"])
    return out, p


if __name__ == "__main__":
    B, D, FF, H = 2, 32, 64, 4

    key = jax.random.PRNGKey(0)
    keys = jax.random.split(key, 16)

    def w(k, shape, scale=0.1):
        return (scale * jax.random.normal(k, shape)).astype(jnp.float32)

    params = {
        "wq": w(keys[0], (D, D)), "bq": w(keys[1], (1, D)),
        "wk": w(keys[2], (D, D)), "bk": w(keys[3], (1, D)),
        "wv": w(keys[4], (D, D)), "bv": w(keys[5], (1, D)),
        "wo": w(keys[6], (D, D)), "bo": w(keys[7], (1, D)),
        "w1": w(keys[8], (D, FF)), "b1": w(keys[9], (1, FF)),
        "w2": w(keys[10], (FF, D)), "b2": w(keys[11], (1, D)),
        "a1": jnp.ones((1, D), jnp.float32), "g1": jnp.zeros((1, D), jnp.float32),
        "a2": jnp.ones((1, D), jnp.float32), "g2": jnp.zeros((1, D), jnp.float32),
    }

    # --- test 1: single query tile (T=8, one tile per batch row) ---
    T = 8
    x = jax.random.normal(keys[12], (B, T, D), dtype=jnp.float32)
    x_mask = jnp.ones((B, T), dtype=jnp.float32)  # unused, matching PyTorch forward

    out, scores = transformer_encode_layer(x, x_mask, params, num_head=H)
    out = jax.block_until_ready(out)
    scores = jax.block_until_ready(scores)

    ref_out, ref_scores = reference(x, params, H)
    assert out.shape == (B, T, D) and scores.shape == (B, H, T, T)
    # bf16 matmul operands -> looser tolerance than pure-f32 reference.
    assert jnp.allclose(out, ref_out, atol=5e-2, rtol=5e-2)
    assert jnp.allclose(scores, ref_scores, atol=2e-2, rtol=2e-2)

    # --- test 2: multiple query tiles (T=16, TQ=8) exercises the K/V scratch reuse ---
    T2 = 16
    x2 = jax.random.normal(keys[13], (B, T2, D), dtype=jnp.float32)
    x2_mask = jnp.ones((B, T2), dtype=jnp.float32)

    out2, scores2 = transformer_encode_layer(x2, x2_mask, params, num_head=H, block_q=8)
    out2 = jax.block_until_ready(out2)
    scores2 = jax.block_until_ready(scores2)

    ref_out2, ref_scores2 = reference(x2, params, H)
    assert out2.shape == (B, T2, D) and scores2.shape == (B, H, T2, T2)
    assert jnp.allclose(out2, ref_out2, atol=5e-2, rtol=5e-2)
    assert jnp.allclose(scores2, ref_scores2, atol=2e-2, rtol=2e-2)

    print("KERNEL_OK")
</pallas_src>

<mosaic_0001>
module attributes {stable_mosaic.version = 11 : i64} {
  func.func @encoder_kernel(%arg0: i32, %arg1: i32, %arg2: memref<1x8x32xf32, #tpu.memory_space<vmem>>, %arg3: memref<1x8x32xf32, #tpu.memory_space<vmem>>, %arg4: memref<32x32xbf16, #tpu.memory_space<vmem>>, %arg5: memref<1x32xf32, #tpu.memory_space<vmem>>, %arg6: memref<32x64xbf16, #tpu.memory_space<vmem>>, %arg7: memref<1x64xf32, #tpu.memory_space<vmem>>, %arg8: memref<32x32xbf16, #tpu.memory_space<vmem>>, %arg9: memref<1x32xf32, #tpu.memory_space<vmem>>, %arg10: memref<32x64xbf16, #tpu.memory_space<vmem>>, %arg11: memref<1x64xf32, #tpu.memory_space<vmem>>, %arg12: memref<64x32xbf16, #tpu.memory_space<vmem>>, %arg13: memref<1x32xf32, #tpu.memory_space<vmem>>, %arg14: memref<1x32xf32, #tpu.memory_space<vmem>>, %arg15: memref<1x32xf32, #tpu.memory_space<vmem>>, %arg16: memref<1x32xf32, #tpu.memory_space<vmem>>, %arg17: memref<1x32xf32, #tpu.memory_space<vmem>>, %arg18: memref<1x8x32xf32, #tpu.memory_space<vmem>>, %arg19: memref<1x4x8x8xf32, #tpu.memory_space<vmem>>, %arg20: memref<8x32xbf16, #tpu.memory_space<vmem>>, %arg21: memref<8x32xbf16, #tpu.memory_space<vmem>>, %arg22: memref<8x32xf32, #tpu.memory_space<vmem>>) attributes {dimension_semantics = [#tpu.dimension_semantics<parallel>, #tpu.dimension_semantics<arbitrary>], iteration_bounds = array<i64: 2, 1>, scalar_prefetch = 0 : i64, scratch_operands = 3 : i64, tpu.core_type = #tpu.core_type<tc>, window_params = [{transform_indices = @transform_0, window_bounds = array<i64: 1, 8, 32>}, {transform_indices = @transform_1, window_bounds = array<i64: 1, 8, 32>}, {pipeline_mode = #tpu.pipeline_mode<synchronous>, transform_indices = @transform_2, window_bounds = array<i64: 32, 32>}, {pipeline_mode = #tpu.pipeline_mode<synchronous>, transform_indices = @transform_3, window_bounds = array<i64: 1, 32>}, {pipeline_mode = #tpu.pipeline_mode<synchronous>, transform_indices = @transform_4, window_bounds = array<i64: 32, 64>}, {pipeline_mode = #tpu.pipeline_mode<synchronous>, transform_indices = @transform_5, window_bounds = array<i64: 1, 64>}, {pipeline_mode = #tpu.pipeline_mode<synchronous>, transform_indices = @transform_6, window_bounds = array<i64: 32, 32>}, {pipeline_mode = #tpu.pipeline_mode<synchronous>, transform_indices = @transform_7, window_bounds = array<i64: 1, 32>}, {pipeline_mode = #tpu.pipeline_mode<synchronous>, transform_indices = @transform_8, window_bounds = array<i64: 32, 64>}, {pipeline_mode = #tpu.pipeline_mode<synchronous>, transform_indices = @transform_9, window_bounds = array<i64: 1, 64>}, {pipeline_mode = #tpu.pipeline_mode<synchronous>, transform_indices = @transform_10, window_bounds = array<i64: 64, 32>}, {pipeline_mode = #tpu.pipeline_mode<synchronous>, transform_indices = @transform_11, window_bounds = array<i64: 1, 32>}, {pipeline_mode = #tpu.pipeline_mode<synchronous>, transform_indices = @transform_12, window_bounds = array<i64: 1, 32>}, {pipeline_mode = #tpu.pipeline_mode<synchronous>, transform_indices = @transform_13, window_bounds = array<i64: 1, 32>}, {pipeline_mode = #tpu.pipeline_mode<synchronous>, transform_indices = @transform_14, window_bounds = array<i64: 1, 32>}, {pipeline_mode = #tpu.pipeline_mode<synchronous>, transform_indices = @transform_15, window_bounds = array<i64: 1, 32>}, {transform_indices = @transform_16, window_bounds = array<i64: 1, 8, 32>}, {transform_indices = @transform_17, window_bounds = array<i64: 1, 4, 8, 8>}]} {
    %c0_i32 = arith.constant 0 : i32
    %0 = arith.cmpi eq, %arg1, %c0_i32 : i32
    %1 = arith.extui %0 : i1 to i32
    %c0_i32_0 = arith.constant 0 : i32
    %2 = arith.cmpi ne, %1, %c0_i32_0 : i32
    scf.if %2 {
      %c0_92 = arith.constant 0 : index
      %c0_93 = arith.constant 0 : index
      %c0_94 = arith.constant 0 : index
      %205 = vector.load %arg3[%c0_92, %c0_93, %c0_94] : memref<1x8x32xf32, #tpu.memory_space<vmem>>, vector<1x8x32xf32>
      %206 = vector.shape_cast %205 : vector<1x8x32xf32> to vector<8x32xf32>
      %207 = arith.truncf %206 : vector<8x32xf32> to vector<8x32xbf16>
      %c0_95 = arith.constant 0 : index
      %c0_96 = arith.constant 0 : index
      %208 = vector.load %arg6[%c0_95, %c0_96] : memref<32x64xbf16, #tpu.memory_space<vmem>>, vector<32x64xbf16>
      %cst_97 = arith.constant dense<0.000000e+00> : vector<8x64xf32>
      %209 = tpu.matmul %207, %208, %cst_97 {dimension_numbers = #tpu.dot_dimension_numbers<[1], [0], [0], [1], [0, 0, 1, 1], [], []>} : vector<8x32xbf16>, vector<32x64xbf16>, vector<8x64xf32> -> vector<8x64xf32>
      %c0_98 = arith.constant 0 : index
      %c0_99 = arith.constant 0 : index
      %210 = vector.load %arg7[%c0_98, %c0_99] : memref<1x64xf32, #tpu.memory_space<vmem>>, vector<1x64xf32>
      %211 = vector.shape_cast %210 : vector<1x64xf32> to vector<64xf32>
      %212 = vector.shape_cast %211 : vector<64xf32> to vector<1x64xf32>
      %213 = vector.broadcast %212 : vector<1x64xf32> to vector<8x64xf32>
      %214 = arith.addf %209, %213 : vector<8x64xf32>
      %215 = vector.extract_strided_slice %214 {offsets = [0, 0], sizes = [8, 32], strides = [1, 1]} : vector<8x64xf32> to vector<8x32xf32>
      %216 = arith.truncf %215 : vector<8x32xf32> to vector<8x32xbf16>
      %c0_100 = arith.constant 0 : index
      %c0_101 = arith.constant 0 : index
      %217 = vector.load %arg20[%c0_100, %c0_101] : memref<8x32xbf16, #tpu.memory_space<vmem>>, vector<8x32xbf16>
      tpu.vector_store %arg20[%c0_100, %c0_101], %216 {strides = array<i32>} : memref<8x32xbf16, #tpu.memory_space<vmem>>, vector<8x32xbf16>,
      %218 = vector.extract_strided_slice %214 {offsets = [0, 32], sizes = [8, 32], strides = [1, 1]} : vector<8x64xf32> to vector<8x32xf32>
      %219 = arith.truncf %218 : vector<8x32xf32> to vector<8x32xbf16>
      %c0_102 = arith.constant 0 : index
      %c0_103 = arith.constant 0 : index
      %220 = vector.load %arg21[%c0_102, %c0_103] : memref<8x32xbf16, #tpu.memory_space<vmem>>, vector<8x32xbf16>
      tpu.vector_store %arg21[%c0_102, %c0_103], %219 {strides = array<i32>} : memref<8x32xbf16, #tpu.memory_space<vmem>>, vector<8x32xbf16>,
    } else {
    }
    %c0 = arith.constant 0 : index
    %c0_1 = arith.constant 0 : index
    %c0_2 = arith.constant 0 : index
    %3 = vector.load %arg2[%c0, %c0_1, %c0_2] : memref<1x8x32xf32, #tpu.memory_space<vmem>>, vector<1x8x32xf32>
    %4 = vector.shape_cast %3 : vector<1x8x32xf32> to vector<8x32xf32>
    %5 = arith.truncf %4 : vector<8x32xf32> to vector<8x32xbf16>
    %c0_3 = arith.constant 0 : index
    %c0_4 = arith.constant 0 : index
    %6 = vector.load %arg4[%c0_3, %c0_4] : memref<32x32xbf16, #tpu.memory_space<vmem>>, vector<32x32xbf16>
    %cst = arith.constant dense<0.000000e+00> : vector<8x32xf32>
    %7 = tpu.matmul %5, %6, %cst {dimension_numbers = #tpu.dot_dimension_numbers<[1], [0], [0], [1], [0, 0, 1, 1], [], []>} : vector<8x32xbf16>, vector<32x32xbf16>, vector<8x32xf32> -> vector<8x32xf32>
    %c0_5 = arith.constant 0 : index
    %c0_6 = arith.constant 0 : index
    %8 = vector.load %arg5[%c0_5, %c0_6] : memref<1x32xf32, #tpu.memory_space<vmem>>, vector<1x32xf32>
    %9 = vector.shape_cast %8 : vector<1x32xf32> to vector<32xf32>
    %10 = vector.shape_cast %9 : vector<32xf32> to vector<1x32xf32>
    %11 = vector.broadcast %10 : vector<1x32xf32> to vector<8x32xf32>
    %12 = arith.addf %7, %11 : vector<8x32xf32>
    %c0_7 = arith.constant 0 : index
    %c0_8 = arith.constant 0 : index
    %13 = vector.load %arg20[%c0_7, %c0_8] : memref<8x32xbf16, #tpu.memory_space<vmem>>, vector<8x32xbf16>
    %c0_9 = arith.constant 0 : index
    %c0_10 = arith.constant 0 : index
    %14 = vector.load %arg21[%c0_9, %c0_10] : memref<8x32xbf16, #tpu.memory_space<vmem>>, vector<8x32xbf16>
    %15 = vector.extract_strided_slice %12 {offsets = [0, 0], sizes = [8, 8], strides = [1, 1]} : vector<8x32xf32> to vector<8x8xf32>
    %16 = arith.truncf %15 : vector<8x8xf32> to vector<8x8xbf16>
    %17 = vector.extract_strided_slice %13 {offsets = [0, 0], sizes = [8, 8], strides = [1, 1]} : vector<8x32xbf16> to vector<8x8xbf16>
    %18 = vector.extract_strided_slice %14 {offsets = [0, 0], sizes = [8, 8], strides = [1, 1]} : vector<8x32xbf16> to vector<8x8xbf16>
    "tpu.trace_start"() <{level = 10 : i32, message = "qd,kd->qk"}> : () -> ()
    %cst_11 = arith.constant dense<0.000000e+00> : vector<8x8xf32>
    %19 = tpu.matmul %16, %17, %cst_11 {dimension_numbers = #tpu.dot_dimension_numbers<[1], [1], [0], [0], [0, 0, 1, 0], [], []>} : vector<8x8xbf16>, vector<8x8xbf16>, vector<8x8xf32> -> vector<8x8xf32>
    "tpu.trace_stop"() : () -> ()
    %cst_12 = arith.constant 0.353553385 : f32
    %20 = vector.broadcast %cst_12 : f32 to vector<8x8xf32>
    %21 = arith.mulf %19, %20 : vector<8x8xf32>
    %cst_13 = arith.constant -6.000000e+03 : f32
    %22 = vector.broadcast %cst_13 : f32 to vector<8x8xf32>
    %23 = arith.maximumf %21, %22 : vector<8x8xf32>
    %cst_14 = arith.constant dense<0xFF800000> : vector<8xf32>
    %24 = vector.multi_reduction <maximumf>, %23, %cst_14 [1] : vector<8x8xf32> to vector<8xf32>
    %25 = vector.shape_cast %24 : vector<8xf32> to vector<8x1xf32>
    %26 = vector.broadcast %25 : vector<8x1xf32> to vector<8x8xf32>
    %27 = arith.subf %23, %26 : vector<8x8xf32>
    %28 = math.exp %27 : vector<8x8xf32>
    %cst_15 = arith.constant dense<0.000000e+00> : vector<8xf32>
    %29 = vector.multi_reduction <add>, %28, %cst_15 [1] : vector<8x8xf32> to vector<8xf32>
    %30 = vector.shape_cast %29 : vector<8xf32> to vector<8x1xf32>
    %31 = tpu.reciprocal %30 {approx = true} : vector<8x1xf32> -> vector<8x1xf32>
    %32 = vector.broadcast %31 : vector<8x1xf32> to vector<8x8xf32>
    %33 = arith.mulf %28, %32 : vector<8x8xf32>
    %c0_16 = arith.constant 0 : index
    %c0_17 = arith.constant 0 : index
    %c0_18 = arith.constant 0 : index
    %c0_19 = arith.constant 0 : index
    %34 = vector.load %arg19[%c0_16, %c0_17, %c0_18, %c0_19] : memref<1x4x8x8xf32, #tpu.memory_space<vmem>>, vector<1x1x8x8xf32>
    %35 = vector.shape_cast %34 : vector<1x1x8x8xf32> to vector<8x8xf32>
    %36 = vector.shape_cast %33 : vector<8x8xf32> to vector<1x1x8x8xf32>
    tpu.vector_store %arg19[%c0_16, %c0_17, %c0_18, %c0_19], %36 {strides = array<i32>} : memref<1x4x8x8xf32, #tpu.memory_space<vmem>>, vector<1x1x8x8xf32>,
    %37 = arith.truncf %33 : vector<8x8xf32> to vector<8x8xbf16>
    %cst_20 = arith.constant dense<0.000000e+00> : vector<8x8xf32>
    %38 = tpu.matmul %37, %18, %cst_20 {dimension_numbers = #tpu.dot_dimension_numbers<[1], [0], [0], [1], [0, 0, 1, 1], [], []>} : vector<8x8xbf16>, vector<8x8xbf16>, vector<8x8xf32> -> vector<8x8xf32>
    %c0_21 = arith.constant 0 : index
    %c0_22 = arith.constant 0 : index
    %39 = vector.load %arg22[%c0_21, %c0_22] : memref<8x32xf32, #tpu.memory_space<vmem>>, vector<8x8xf32>
    tpu.vector_store %arg22[%c0_21, %c0_22], %38 {strides = array<i32>} : memref<8x32xf32, #tpu.memory_space<vmem>>, vector<8x8xf32>,
    %40 = vector.extract_strided_slice %12 {offsets = [0, 8], sizes = [8, 8], strides = [1, 1]} : vector<8x32xf32> to vector<8x8xf32>
    %41 = arith.truncf %40 : vector<8x8xf32> to vector<8x8xbf16>
    %42 = vector.extract_strided_slice %13 {offsets = [0, 8], sizes = [8, 8], strides = [1, 1]} : vector<8x32xbf16> to vector<8x8xbf16>
    %43 = vector.extract_strided_slice %14 {offsets = [0, 8], sizes = [8, 8], strides = [1, 1]} : vector<8x32xbf16> to vector<8x8xbf16>
    "tpu.trace_start"() <{level = 10 : i32, message = "qd,kd->qk"}> : () -> ()
    %cst_23 = arith.constant dense<0.000000e+00> : vector<8x8xf32>
    %44 = tpu.matmul %41, %42, %cst_23 {dimension_numbers = #tpu.dot_dimension_numbers<[1], [1], [0], [0], [0, 0, 1, 0], [], []>} : vector<8x8xbf16>, vector<8x8xbf16>, vector<8x8xf32> -> vector<8x8xf32>
    "tpu.trace_stop"() : () -> ()
    %cst_24 = arith.constant 0.353553385 : f32
    %45 = vector.broadcast %cst_24 : f32 to vector<8x8xf32>
    %46 = arith.mulf %44, %45 : vector<8x8xf32>
    %cst_25 = arith.constant -6.000000e+03 : f32
    %47 = vector.broadcast %cst_25 : f32 to vector<8x8xf32>
    %48 = arith.maximumf %46, %47 : vector<8x8xf32>
    %cst_26 = arith.constant dense<0xFF800000> : vector<8xf32>
    %49 = vector.multi_reduction <maximumf>, %48, %cst_26 [1] : vector<8x8xf32> to vector<8xf32>
    %50 = vector.shape_cast %49 : vector<8xf32> to vector<8x1xf32>
    %51 = vector.broadcast %50 : vector<8x1xf32> to vector<8x8xf32>
    %52 = arith.subf %48, %51 : vector<8x8xf32>
    %53 = math.exp %52 : vector<8x8xf32>
    %cst_27 = arith.constant dense<0.000000e+00> : vector<8xf32>
    %54 = vector.multi_reduction <add>, %53, %cst_27 [1] : vector<8x8xf32> to vector<8xf32>
    %55 = vector.shape_cast %54 : vector<8xf32> to vector<8x1xf32>
    %56 = tpu.reciprocal %55 {approx = true} : vector<8x1xf32> -> vector<8x1xf32>
    %57 = vector.broadcast %56 : vector<8x1xf32> to vector<8x8xf32>
    %58 = arith.mulf %53, %57 : vector<8x8xf32>
    %c0_28 = arith.constant 0 : index
    %c1 = arith.constant 1 : index
    %c0_29 = arith.constant 0 : index
    %c0_30 = arith.constant 0 : index
    %59 = vector.load %arg19[%c0_28, %c1, %c0_29, %c0_30] : memref<1x4x8x8xf32, #tpu.memory_space<vmem>>, vector<1x1x8x8xf32>
    %60 = vector.shape_cast %59 : vector<1x1x8x8xf32> to vector<8x8xf32>
    %61 = vector.shape_cast %58 : vector<8x8xf32> to vector<1x1x8x8xf32>
    tpu.vector_store %arg19[%c0_28, %c1, %c0_29, %c0_30], %61 {strides = array<i32>} : memref<1x4x8x8xf32, #tpu.memory_space<vmem>>, vector<1x1x8x8xf32>,
    %62 = arith.truncf %58 : vector<8x8xf32> to vector<8x8xbf16>
    %cst_31 = arith.constant dense<0.000000e+00> : vector<8x8xf32>
    %63 = tpu.matmul %62, %43, %cst_31 {dimension_numbers = #tpu.dot_dimension_numbers<[1], [0], [0], [1], [0, 0, 1, 1], [], []>} : vector<8x8xbf16>, vector<8x8xbf16>, vector<8x8xf32> -> vector<8x8xf32>
    %c0_32 = arith.constant 0 : index
    %c8 = arith.constant 8 : index
    %64 = vector.load %arg22[%c0_32, %c8] : memref<8x32xf32, #tpu.memory_space<vmem>>, vector<8x8xf32>
    tpu.vector_store %arg22[%c0_32, %c8], %63 {strides = array<i32>} : memref<8x32xf32, #tpu.memory_space<vmem>>, vector<8x8xf32>,
    %65 = vector.extract_strided_slice %12 {offsets = [0, 16], sizes = [8, 8], strides = [1, 1]} : vector<8x32xf32> to vector<8x8xf32>
    %66 = arith.truncf %65 : vector<8x8xf32> to vector<8x8xbf16>
    %67 = vector.extract_strided_slice %13 {offsets = [0, 16], sizes = [8, 8], strides = [1, 1]} : vector<8x32xbf16> to vector<8x8xbf16>
    %68 = vector.extract_strided_slice %14 {offsets = [0, 16], sizes = [8, 8], strides = [1, 1]} : vector<8x32xbf16> to vector<8x8xbf16>
    "tpu.trace_start"() <{level = 10 : i32, message = "qd,kd->qk"}> : () -> ()
    %cst_33 = arith.constant dense<0.000000e+00> : vector<8x8xf32>
    %69 = tpu.matmul %66, %67, %cst_33 {dimension_numbers = #tpu.dot_dimension_numbers<[1], [1], [0], [0], [0, 0, 1, 0], [], []>} : vector<8x8xbf16>, vector<8x8xbf16>, vector<8x8xf32> -> vector<8x8xf32>
    "tpu.trace_stop"() : () -> ()
    %cst_34 = arith.constant 0.353553385 : f32
    %70 = vector.broadcast %cst_34 : f32 to vector<8x8xf32>
    %71 = arith.mulf %69, %70 : vector<8x8xf32>
    %cst_35 = arith.constant -6.000000e+03 : f32
    %72 = vector.broadcast %cst_35 : f32 to vector<8x8xf32>
    %73 = arith.maximumf %71, %72 : vector<8x8xf32>
    %cst_36 = arith.constant dense<0xFF800000> : vector<8xf32>
    %74 = vector.multi_reduction <maximumf>, %73, %cst_36 [1] : vector<8x8xf32> to vector<8xf32>
    %75 = vector.shape_cast %74 : vector<8xf32> to vector<8x1xf32>
    %76 = vector.broadcast %75 : vector<8x1xf32> to vector<8x8xf32>
    %77 = arith.subf %73, %76 : vector<8x8xf32>
    %78 = math.exp %77 : vector<8x8xf32>
    %cst_37 = arith.constant dense<0.000000e+00> : vector<8xf32>
    %79 = vector.multi_reduction <add>, %78, %cst_37 [1] : vector<8x8xf32> to vector<8xf32>
    %80 = vector.shape_cast %79 : vector<8xf32> to vector<8x1xf32>
    %81 = tpu.reciprocal %80 {approx = true} : vector<8x1xf32> -> vector<8x1xf32>
    %82 = vector.broadcast %81 : vector<8x1xf32> to vector<8x8xf32>
    %83 = arith.mulf %78, %82 : vector<8x8xf32>
    %c0_38 = arith.constant 0 : index
    %c2 = arith.constant 2 : index
    %c0_39 = arith.constant 0 : index
    %c0_40 = arith.constant 0 : index
    %84 = vector.load %arg19[%c0_38, %c2, %c0_39, %c0_40] : memref<1x4x8x8xf32, #tpu.memory_space<vmem>>, vector<1x1x8x8xf32>
    %85 = vector.shape_cast %84 : vector<1x1x8x8xf32> to vector<8x8xf32>
    %86 = vector.shape_cast %83 : vector<8x8xf32> to vector<1x1x8x8xf32>
    tpu.vector_store %arg19[%c0_38, %c2, %c0_39, %c0_40], %86 {strides = array<i32>} : memref<1x4x8x8xf32, #tpu.memory_space<vmem>>, vector<1x1x8x8xf32>,
    %87 = arith.truncf %83 : vector<8x8xf32> to vector<8x8xbf16>
    %cst_41 = arith.constant dense<0.000000e+00> : vector<8x8xf32>
    %88 = tpu.matmul %87, %68, %cst_41 {dimension_numbers = #tpu.dot_dimension_numbers<[1], [0], [0], [1], [0, 0, 1, 1], [], []>} : vector<8x8xbf16>, vector<8x8xbf16>, vector<8x8xf32> -> vector<8x8xf32>
    %c0_42 = arith.constant 0 : index
    %c16 = arith.constant 16 : index
    %89 = vector.load %arg22[%c0_42, %c16] : memref<8x32xf32, #tpu.memory_space<vmem>>, vector<8x8xf32>
    tpu.vector_store %arg22[%c0_42, %c16], %88 {strides = array<i32>} : memref<8x32xf32, #tpu.memory_space<vmem>>, vector<8x8xf32>,
    %90 = vector.extract_strided_slice %12 {offsets = [0, 24], sizes = [8, 8], strides = [1, 1]} : vector<8x32xf32> to vector<8x8xf32>
    %91 = arith.truncf %90 : vector<8x8xf32> to vector<8x8xbf16>
    %92 = vector.extract_strided_slice %13 {offsets = [0, 24], sizes = [8, 8], strides = [1, 1]} : vector<8x32xbf16> to vector<8x8xbf16>
    %93 = vector.extract_strided_slice %14 {offsets = [0, 24], sizes = [8, 8], strides = [1, 1]} : vector<8x32xbf16> to vector<8x8xbf16>
    "tpu.trace_start"() <{level = 10 : i32, message = "qd,kd->qk"}> : () -> ()
    %cst_43 = arith.constant dense<0.000000e+00> : vector<8x8xf32>
    %94 = tpu.matmul %91, %92, %cst_43 {dimension_numbers = #tpu.dot_dimension_numbers<[1], [1], [0], [0], [0, 0, 1, 0], [], []>} : vector<8x8xbf16>, vector<8x8xbf16>, vector<8x8xf32> -> vector<8x8xf32>
    "tpu.trace_stop"() : () -> ()
    %cst_44 = arith.constant 0.353553385 : f32
    %95 = vector.broadcast %cst_44 : f32 to vector<8x8xf32>
    %96 = arith.mulf %94, %95 : vector<8x8xf32>
    %cst_45 = arith.constant -6.000000e+03 : f32
    %97 = vector.broadcast %cst_45 : f32 to vector<8x8xf32>
    %98 = arith.maximumf %96, %97 : vector<8x8xf32>
    %cst_46 = arith.constant dense<0xFF800000> : vector<8xf32>
    %99 = vector.multi_reduction <maximumf>, %98, %cst_46 [1] : vector<8x8xf32> to vector<8xf32>
    %100 = vector.shape_cast %99 : vector<8xf32> to vector<8x1xf32>
    %101 = vector.broadcast %100 : vector<8x1xf32> to vector<8x8xf32>
    %102 = arith.subf %98, %101 : vector<8x8xf32>
    %103 = math.exp %102 : vector<8x8xf32>
    %cst_47 = arith.constant dense<0.000000e+00> : vector<8xf32>
    %104 = vector.multi_reduction <add>, %103, %cst_47 [1] : vector<8x8xf32> to vector<8xf32>
    %105 = vector.shape_cast %104 : vector<8xf32> to vector<8x1xf32>
    %106 = tpu.reciprocal %105 {approx = true} : vector<8x1xf32> -> vector<8x1xf32>
    %107 = vector.broadcast %106 : vector<8x1xf32> to vector<8x8xf32>
    %108 = arith.mulf %103, %107 : vector<8x8xf32>
    %c0_48 = arith.constant 0 : index
    %c3 = arith.constant 3 : index
    %c0_49 = arith.constant 0 : index
    %c0_50 = arith.constant 0 : index
    %109 = vector.load %arg19[%c0_48, %c3, %c0_49, %c0_50] : memref<1x4x8x8xf32, #tpu.memory_space<vmem>>, vector<1x1x8x8xf32>
    %110 = vector.shape_cast %109 : vector<1x1x8x8xf32> to vector<8x8xf32>
    %111 = vector.shape_cast %108 : vector<8x8xf32> to vector<1x1x8x8xf32>
    tpu.vector_store %arg19[%c0_48, %c3, %c0_49, %c0_50], %111 {strides = array<i32>} : memref<1x4x8x8xf32, #tpu.memory_space<vmem>>, vector<1x1x8x8xf32>,
    %112 = arith.truncf %108 : vector<8x8xf32> to vector<8x8xbf16>
    %cst_51 = arith.constant dense<0.000000e+00> : vector<8x8xf32>
    %113 = tpu.matmul %112, %93, %cst_51 {dimension_numbers = #tpu.dot_dimension_numbers<[1], [0], [0], [1], [0, 0, 1, 1], [], []>} : vector<8x8xbf16>, vector<8x8xbf16>, vector<8x8xf32> -> vector<8x8xf32>
    %c0_52 = arith.constant 0 : index
    %c24 = arith.constant 24 : index
    %114 = vector.load %arg22[%c0_52, %c24] : memref<8x32xf32, #tpu.memory_space<vmem>>, vector<8x8xf32>
    tpu.vector_store %arg22[%c0_52, %c24], %113 {strides = array<i32>} : memref<8x32xf32, #tpu.memory_space<vmem>>, vector<8x8xf32>,
    %c0_53 = arith.constant 0 : index
    %c0_54 = arith.constant 0 : index
    %115 = vector.load %arg22[%c0_53, %c0_54] : memref<8x32xf32, #tpu.memory_space<vmem>>, vector<8x32xf32>
    %116 = arith.truncf %115 : vector<8x32xf32> to vector<8x32xbf16>
    %c0_55 = arith.constant 0 : index
    %c0_56 = arith.constant 0 : index
    %117 = vector.load %arg8[%c0_55, %c0_56] : memref<32x32xbf16, #tpu.memory_space<vmem>>, vector<32x32xbf16>
    %cst_57 = arith.constant dense<0.000000e+00> : vector<8x32xf32>
    %118 = tpu.matmul %116, %117, %cst_57 {dimension_numbers = #tpu.dot_dimension_numbers<[1], [0], [0], [1], [0, 0, 1, 1], [], []>} : vector<8x32xbf16>, vector<32x32xbf16>, vector<8x32xf32> -> vector<8x32xf32>
    %c0_58 = arith.constant 0 : index
    %c0_59 = arith.constant 0 : index
    %119 = vector.load %arg9[%c0_58, %c0_59] : memref<1x32xf32, #tpu.memory_space<vmem>>, vector<1x32xf32>
    %120 = vector.shape_cast %119 : vector<1x32xf32> to vector<32xf32>
    %121 = vector.shape_cast %120 : vector<32xf32> to vector<1x32xf32>
    %122 = vector.broadcast %121 : vector<1x32xf32> to vector<8x32xf32>
    %123 = arith.addf %118, %122 : vector<8x32xf32>
    %124 = arith.addf %4, %123 : vector<8x32xf32>
    %c0_60 = arith.constant 0 : index
    %c0_61 = arith.constant 0 : index
    %125 = vector.load %arg14[%c0_60, %c0_61] : memref<1x32xf32, #tpu.memory_space<vmem>>, vector<1x32xf32>
    %126 = vector.shape_cast %125 : vector<1x32xf32> to vector<32xf32>
    %c0_62 = arith.constant 0 : index
    %c0_63 = arith.constant 0 : index
    %127 = vector.load %arg15[%c0_62, %c0_63] : memref<1x32xf32, #tpu.memory_space<vmem>>, vector<1x32xf32>
    %128 = vector.shape_cast %127 : vector<1x32xf32> to vector<32xf32>
    %cst_64 = arith.constant dense<0.000000e+00> : vector<8xf32>
    %129 = vector.multi_reduction <add>, %124, %cst_64 [1] : vector<8x32xf32> to vector<8xf32>
    %130 = vector.shape_cast %129 : vector<8xf32> to vector<8x1xf32>
    %cst_65 = arith.constant 3.200000e+01 : f32
    %131 = vector.broadcast %cst_65 : f32 to vector<8x1xf32>
    %132 = arith.divf %130, %131 : vector<8x1xf32>
    %133 = vector.broadcast %132 : vector<8x1xf32> to vector<8x32xf32>
    %134 = arith.subf %124, %133 : vector<8x32xf32>
    %135 = arith.mulf %134, %134 : vector<8x32xf32>
    %cst_66 = arith.constant dense<0.000000e+00> : vector<8xf32>
    %136 = vector.multi_reduction <add>, %135, %cst_66 [1] : vector<8x32xf32> to vector<8xf32>
    %137 = vector.shape_cast %136 : vector<8xf32> to vector<8x1xf32>
    %cst_67 = arith.constant 0.0322580636 : f32
    %138 = vector.broadcast %cst_67 : f32 to vector<8x1xf32>
    %139 = arith.mulf %137, %138 : vector<8x1xf32>
    %140 = math.sqrt %139 : vector<8x1xf32>
    %cst_68 = arith.constant 9.99999997E-7 : f32
    %141 = vector.broadcast %cst_68 : f32 to vector<8x1xf32>
    %142 = arith.addf %140, %141 : vector<8x1xf32>
    %143 = tpu.reciprocal %142 {approx = true} : vector<8x1xf32> -> vector<8x1xf32>
    %144 = vector.broadcast %132 : vector<8x1xf32> to vector<8x32xf32>
    %145 = arith.subf %124, %144 : vector<8x32xf32>
    %146 = vector.broadcast %143 : vector<8x1xf32> to vector<8x32xf32>
    %147 = arith.mulf %145, %146 : vector<8x32xf32>
    %148 = vector.shape_cast %126 : vector<32xf32> to vector<1x32xf32>
    %149 = vector.broadcast %148 : vector<1x32xf32> to vector<8x32xf32>
    %150 = arith.mulf %149, %147 : vector<8x32xf32>
    %151 = vector.shape_cast %128 : vector<32xf32> to vector<1x32xf32>
    %152 = vector.broadcast %151 : vector<1x32xf32> to vector<8x32xf32>
    %153 = arith.addf %150, %152 : vector<8x32xf32>
    %154 = arith.truncf %153 : vector<8x32xf32> to vector<8x32xbf16>
    %c0_69 = arith.constant 0 : index
    %c0_70 = arith.constant 0 : index
    %155 = vector.load %arg10[%c0_69, %c0_70] : memref<32x64xbf16, #tpu.memory_space<vmem>>, vector<32x64xbf16>
    %cst_71 = arith.constant dense<0.000000e+00> : vector<8x64xf32>
    %156 = tpu.matmul %154, %155, %cst_71 {dimension_numbers = #tpu.dot_dimension_numbers<[1], [0], [0], [1], [0, 0, 1, 1], [], []>} : vector<8x32xbf16>, vector<32x64xbf16>, vector<8x64xf32> -> vector<8x64xf32>
    %c0_72 = arith.constant 0 : index
    %c0_73 = arith.constant 0 : index
    %157 = vector.load %arg11[%c0_72, %c0_73] : memref<1x64xf32, #tpu.memory_space<vmem>>, vector<1x64xf32>
    %158 = vector.shape_cast %157 : vector<1x64xf32> to vector<64xf32>
    %159 = vector.shape_cast %158 : vector<64xf32> to vector<1x64xf32>
    %160 = vector.broadcast %159 : vector<1x64xf32> to vector<8x64xf32>
    %161 = arith.addf %156, %160 : vector<8x64xf32>
    %cst_74 = arith.constant 0.000000e+00 : f32
    %162 = vector.broadcast %cst_74 : f32 to vector<8x64xf32>
    %163 = arith.maximumf %161, %162 : vector<8x64xf32>
    %164 = arith.truncf %163 : vector<8x64xf32> to vector<8x64xbf16>
    %c0_75 = arith.constant 0 : index
    %c0_76 = arith.constant 0 : index
    %165 = vector.load %arg12[%c0_75, %c0_76] : memref<64x32xbf16, #tpu.memory_space<vmem>>, vector<64x32xbf16>
    %cst_77 = arith.constant dense<0.000000e+00> : vector<8x32xf32>
    %166 = tpu.matmul %164, %165, %cst_77 {dimension_numbers = #tpu.dot_dimension_numbers<[1], [0], [0], [1], [0, 0, 1, 1], [], []>} : vector<8x64xbf16>, vector<64x32xbf16>, vector<8x32xf32> -> vector<8x32xf32>
    %c0_78 = arith.constant 0 : index
    %c0_79 = arith.constant 0 : index
    %167 = vector.load %arg13[%c0_78, %c0_79] : memref<1x32xf32, #tpu.memory_space<vmem>>, vector<1x32xf32>
    %168 = vector.shape_cast %167 : vector<1x32xf32> to vector<32xf32>
    %169 = vector.shape_cast %168 : vector<32xf32> to vector<1x32xf32>
    %170 = vector.broadcast %169 : vector<1x32xf32> to vector<8x32xf32>
    %171 = arith.addf %166, %170 : vector<8x32xf32>
    %172 = arith.addf %153, %171 : vector<8x32xf32>
    %c0_80 = arith.constant 0 : index
    %c0_81 = arith.constant 0 : index
    %173 = vector.load %arg16[%c0_80, %c0_81] : memref<1x32xf32, #tpu.memory_space<vmem>>, vector<1x32xf32>
    %174 = vector.shape_cast %173 : vector<1x32xf32> to vector<32xf32>
    %c0_82 = arith.constant 0 : index
    %c0_83 = arith.constant 0 : index
    %175 = vector.load %arg17[%c0_82, %c0_83] : memref<1x32xf32, #tpu.memory_space<vmem>>, vector<1x32xf32>
    %176 = vector.shape_cast %175 : vector<1x32xf32> to vector<32xf32>
    %cst_84 = arith.constant dense<0.000000e+00> : vector<8xf32>
    %177 = vector.multi_reduction <add>, %172, %cst_84 [1] : vector<8x32xf32> to vector<8xf32>
    %178 = vector.shape_cast %177 : vector<8xf32> to vector<8x1xf32>
    %cst_85 = arith.constant 3.200000e+01 : f32
    %179 = vector.broadcast %cst_85 : f32 to vector<8x1xf32>
    %180 = arith.divf %178, %179 : vector<8x1xf32>
    %181 = vector.broadcast %180 : vector<8x1xf32> to vector<8x32xf32>
    %182 = arith.subf %172, %181 : vector<8x32xf32>
    %183 = arith.mulf %182, %182 : vector<8x32xf32>
    %cst_86 = arith.constant dense<0.000000e+00> : vector<8xf32>
    %184 = vector.multi_reduction <add>, %183, %cst_86 [1] : vector<8x32xf32> to vector<8xf32>
    %185 = vector.shape_cast %184 : vector<8xf32> to vector<8x1xf32>
    %cst_87 = arith.constant 0.0322580636 : f32
    %186 = vector.broadcast %cst_87 : f32 to vector<8x1xf32>
    %187 = arith.mulf %185, %186 : vector<8x1xf32>
    %188 = math.sqrt %187 : vector<8x1xf32>
    %cst_88 = arith.constant 9.99999997E-7 : f32
    %189 = vector.broadcast %cst_88 : f32 to vector<8x1xf32>
    %190 = arith.addf %188, %189 : vector<8x1xf32>
    %191 = tpu.reciprocal %190 {approx = true} : vector<8x1xf32> -> vector<8x1xf32>
    %192 = vector.broadcast %180 : vector<8x1xf32> to vector<8x32xf32>
    %193 = arith.subf %172, %192 : vector<8x32xf32>
    %194 = vector.broadcast %191 : vector<8x1xf32> to vector<8x32xf32>
    %195 = arith.mulf %193, %194 : vector<8x32xf32>
    %196 = vector.shape_cast %174 : vector<32xf32> to vector<1x32xf32>
    %197 = vector.broadcast %196 : vector<1x32xf32> to vector<8x32xf32>
    %198 = arith.mulf %197, %195 : vector<8x32xf32>
    %199 = vector.shape_cast %176 : vector<32xf32> to vector<1x32xf32>
    %200 = vector.broadcast %199 : vector<1x32xf32> to vector<8x32xf32>
    %201 = arith.addf %198, %200 : vector<8x32xf32>
    %c0_89 = arith.constant 0 : index
    %c0_90 = arith.constant 0 : index
    %c0_91 = arith.constant 0 : index
    %202 = vector.load %arg18[%c0_89, %c0_90, %c0_91] : memref<1x8x32xf32, #tpu.memory_space<vmem>>, vector<1x8x32xf32>
    %203 = vector.shape_cast %202 : vector<1x8x32xf32> to vector<8x32xf32>
    %204 = vector.shape_cast %201 : vector<8x32xf32> to vector<1x8x32xf32>
    tpu.vector_store %arg18[%c0_89, %c0_90, %c0_91], %204 {strides = array<i32>} : memref<1x8x32xf32, #tpu.memory_space<vmem>>, vector<1x8x32xf32>,
    return
  }
  func.func @transform_0(%arg0: i32, %arg1: i32) -> (i32, i32, i32) {
    %c0_i32 = arith.constant 0 : i32
    %c0_i32_0 = arith.constant 0 : i32
    return %arg0, %arg1, %c0_i32 : i32, i32, i32
  }
  func.func @transform_1(%arg0: i32, %arg1: i32) -> (i32, i32, i32) {
    %c0_i32 = arith.constant 0 : i32
    %c0_i32_0 = arith.constant 0 : i32
    %c0_i32_1 = arith.constant 0 : i32
    return %arg0, %c0_i32, %c0_i32_0 : i32, i32, i32
  }
  func.func @transform_2(%arg0: i32, %arg1: i32) -> (i32, i32) {
    %c0_i32 = arith.constant 0 : i32
    %c0_i32_0 = arith.constant 0 : i32
    %c0_i32_1 = arith.constant 0 : i32
    return %c0_i32, %c0_i32_0 : i32, i32
  }
  func.func @transform_3(%arg0: i32, %arg1: i32) -> (i32, i32) {
    %c0_i32 = arith.constant 0 : i32
    %c0_i32_0 = arith.constant 0 : i32
    %c0_i32_1 = arith.constant 0 : i32
    return %c0_i32, %c0_i32_0 : i32, i32
  }
  func.func @transform_4(%arg0: i32, %arg1: i32) -> (i32, i32) {
    %c0_i32 = arith.constant 0 : i32
    %c0_i32_0 = arith.constant 0 : i32
    %c0_i32_1 = arith.constant 0 : i32
    return %c0_i32, %c0_i32_0 : i32, i32
  }
  func.func @transform_5(%arg0: i32, %arg1: i32) -> (i32, i32) {
    %c0_i32 = arith.constant 0 : i32
    %c0_i32_0 = arith.constant 0 : i32
    %c0_i32_1 = arith.constant 0 : i32
    return %c0_i32, %c0_i32_0 : i32, i32
  }
  func.func @transform_6(%arg0: i32, %arg1: i32) -> (i32, i32) {
    %c0_i32 = arith.constant 0 : i32
    %c0_i32_0 = arith.constant 0 : i32
    %c0_i32_1 = arith.constant 0 : i32
    return %c0_i32, %c0_i32_0 : i32, i32
  }
  func.func @transform_7(%arg0: i32, %arg1: i32) -> (i32, i32) {
    %c0_i32 = arith.constant 0 : i32
    %c0_i32_0 = arith.constant 0 : i32
    %c0_i32_1 = arith.constant 0 : i32
    return %c0_i32, %c0_i32_0 : i32, i32
  }
  func.func @transform_8(%arg0: i32, %arg1: i32) -> (i32, i32) {
    %c0_i32 = arith.constant 0 : i32
    %c0_i32_0 = arith.constant 0 : i32
    %c0_i32_1 = arith.constant 0 : i32
    return %c0_i32, %c0_i32_0 : i32, i32
  }
  func.func @transform_9(%arg0: i32, %arg1: i32) -> (i32, i32) {
    %c0_i32 = arith.constant 0 : i32
    %c0_i32_0 = arith.constant 0 : i32
    %c0_i32_1 = arith.constant 0 : i32
    return %c0_i32, %c0_i32_0 : i32, i32
  }
  func.func @transform_10(%arg0: i32, %arg1: i32) -> (i32, i32) {
    %c0_i32 = arith.constant 0 : i32
    %c0_i32_0 = arith.constant 0 : i32
    %c0_i32_1 = arith.constant 0 : i32
    return %c0_i32, %c0_i32_0 : i32, i32
  }
  func.func @transform_11(%arg0: i32, %arg1: i32) -> (i32, i32) {
    %c0_i32 = arith.constant 0 : i32
    %c0_i32_0 = arith.constant 0 : i32
    %c0_i32_1 = arith.constant 0 : i32
    return %c0_i32, %c0_i32_0 : i32, i32
  }
  func.func @transform_12(%arg0: i32, %arg1: i32) -> (i32, i32) {
    %c0_i32 = arith.constant 0 : i32
    %c0_i32_0 = arith.constant 0 : i32
    %c0_i32_1 = arith.constant 0 : i32
    return %c0_i32, %c0_i32_0 : i32, i32
  }
  func.func @transform_13(%arg0: i32, %arg1: i32) -> (i32, i32) {
    %c0_i32 = arith.constant 0 : i32
    %c0_i32_0 = arith.constant 0 : i32
    %c0_i32_1 = arith.constant 0 : i32
    return %c0_i32, %c0_i32_0 : i32, i32
  }
  func.func @transform_14(%arg0: i32, %arg1: i32) -> (i32, i32) {
    %c0_i32 = arith.constant 0 : i32
    %c0_i32_0 = arith.constant 0 : i32
    %c0_i32_1 = arith.constant 0 : i32
    return %c0_i32, %c0_i32_0 : i32, i32
  }
  func.func @transform_15(%arg0: i32, %arg1: i32) -> (i32, i32) {
    %c0_i32 = arith.constant 0 : i32
    %c0_i32_0 = arith.constant 0 : i32
    %c0_i32_1 = arith.constant 0 : i32
    return %c0_i32, %c0_i32_0 : i32, i32
  }
  func.func @transform_16(%arg0: i32, %arg1: i32) -> (i32, i32, i32) {
    %c0_i32 = arith.constant 0 : i32
    %c0_i32_0 = arith.constant 0 : i32
    return %arg0, %arg1, %c0_i32 : i32, i32, i32
  }
  func.func @transform_17(%arg0: i32, %arg1: i32) -> (i32, i32, i32, i32) {
    %c0_i32 = arith.constant 0 : i32
    %c0_i32_0 = arith.constant 0 : i32
    %c0_i32_1 = arith.constant 0 : i32
    return %arg0, %c0_i32, %arg1, %c0_i32_0 : i32, i32, i32, i32
  }
}

</mosaic_0001>

<bundles_post_ra>
// kernel: tpu_custom_call.1
= control target key start
LH: loop header
LB: loop body
LE: loop exit
PB: predicated region body
PF: predicated region fallthrough
CT: control target
= control target key end

     0   :  { %s2803_s0 = inlined_call_operand.vmem [shape: f32[2,8,32], index: 0, kind: input, shape index: {}]   ;;  %s2804_s1 = inlined_call_operand.vmem [shape: f32[2,8,32], index: 1, kind: input, shape index: {}]   ;;  %s2805_s2 = inlined_call_operand.vmem [shape: bf16[32,32], index: 2, kind: input, shape index: {}]   ;;  %s2806_s3 = inlined_call_operand.vmem [shape: f32[1,32], index: 3, kind: input, shape index: {}]   ;;  %s2807_s4 = inlined_call_operand.hbm [shape: bf16[32,64], index: 4, kind: input, shape index: {}]   ;;  %s2808_s5 = inlined_call_operand.vmem [shape: f32[1,64], index: 5, kind: input, shape index: {}]   ;;  %s2809_s6 = inlined_call_operand.hbm [shape: bf16[32,32], index: 6, kind: input, shape index: {}]   ;;  %s2810_s7 = inlined_call_operand.vmem [shape: f32[1,32], index: 7, kind: input, shape index: {}]   ;;  %s2811_s8 = inlined_call_operand.hbm [shape: bf16[32,64], index: 8, kind: input, shape index: {}]   ;;  %s2812_s9 = inlined_call_operand.vmem [shape: f32[1,64], index: 9, kind: input, shape index: {}]   ;;  %s2813_s10 = inlined_call_operand.vmem [shape: bf16[64,32], index: 10, kind: input, shape index: {}]   ;;  %s2814_s11 = inlined_call_operand.vmem [shape: f32[1,32], index: 11, kind: input, shape index: {}]   ;;  %s2815_s12 = inlined_call_operand.vmem [shape: f32[1,32], index: 12, kind: input, shape index: {}]   ;;  %s2816_s13 = inlined_call_operand.vmem [shape: f32[1,32], index: 13, kind: input, shape index: {}]   ;;  %s2817_s14 = inlined_call_operand.vmem [shape: f32[1,32], index: 14, kind: input, shape index: {}]   ;;  %s2818_s15 = inlined_call_operand.vmem [shape: f32[1,32], index: 15, kind: input, shape index: {}]   ;;  %s2819_s16 = inlined_call_operand.hbm [shape: f32[2,8,32], index: 16, kind: output, shape index: {0}]   ;;  %s2820_s17 = inlined_call_operand.hbm [shape: f32[2,4,8,8], index: 17, kind: output, shape index: {1}]  }
   0x1   :  { %2836 = sst [smem:[#allocation26_spill]] %s2803_s0 }
   0x2   :  { %2837 = sst [smem:[#allocation27_spill]] %s2804_s1 }
   0x3   :  { %2838 = sst [smem:[#allocation28_spill]] %s2809_s6 }
   0x4   :  { %2839 = sst [smem:[#allocation29_spill]] %s2817_s14 }
   0x5   :  { %2840 = sst [smem:[#allocation30_spill]] %s2818_s15 }
   0x6   :  { %2841 = sst [smem:[#allocation31_spill]] %s2819_s16 }
   0x7   :  { %2842 = sst [smem:[#allocation32_spill]] %s2820_s17 }
   0x8   :  { %23 = vsyncpa [#allocation6], 0 }
   0x9   :  { %24 = vsyncpa [#allocation9], 0 }
   0xa   :  { %25 = vsyncpa [#allocation7], 0 }
   0xb   :  { %27 = vsyncpa [#allocation7 + $0x1], 0 }
   0xc   :  { %28 = vsyncpa [#allocation13], 0 }
   0xd   :  { %30 = vsyncpa [#allocation13 + $0x1], 0  ;;  %s2398_s24 = smov 0   ;;  %s2400_s25 = smov 0  }
   0xe   :  { %s2402_s26 = smov 0   ;;  %s2404_s27 = smov 0  }
   0xf   :  { %s2406_s28 = smov 0   ;;  %s2408_s29 = smov 0  }
  0x10 LB: > { %2843 = sst [smem:[#allocation18_spill]] %s2269_s24  ;;  %s1757_s0 = sadd.s32 4294967295, %s2289_s29   ;;  %s2289_s29 = sphi %s2408_s29, %s36_s29   ;;  %s2285_s28 = sphi %s2406_s28, %s2876_s28   ;;  %s2281_s27 = sphi %s2404_s27, %s2875_s27   ;;  %s2277_s26 = sphi %s2402_s26, %s2879_s26   ;;  %s2273_s25 = sphi %s2400_s25, %s2878_s25   ;;  %s2269_s24 = sphi %s2398_s24, %s2877_s24  }
  0x11   : > { %2844 = sst [smem:[#allocation19_spill]] %s2277_s26  ;;  %s1758_s30 = sadd.s32 4294967294, %s2289_s29  }
  0x12   : > { %2845 = sst [smem:[#allocation20_spill]] %s2285_s28  ;;  %s48_s18 = sadd.s32 1, %s2285_s28 }
  0x13   : > { %2846 = sst [smem:[#allocation21_spill]] %s2289_s29  ;;  %s405_s19 = sadd.s32 1, %s2277_s26 }
  0x14   : > { %p50_p0 = scmp.ge.s32.totalorder %s48_s18, 2  ;;  %p415_p1 = scmp.ne.s32.totalorder %s2277_s26, %s2273_s25 }
  0x15   : > { %p416_p2 = scmp.eq.s32.totalorder %s1757_s0, 1  ;;  %p421_p3 = scmp.ne.s32.totalorder %s2273_s25, %s2269_s24 }
  0x16   : > { %s2881_s18 = smov (%p50_p0, %s48_s18), 0  ;;  %p422_p5 = scmp.eq.s32.totalorder %s1758_s30, 1 }
  0x17   : > { %2847 = sst [smem:[#allocation22_spill]] %s2881_s18  ;;  %p2438_p4 = por %p416_p2, %p415_p1 }
  0x18   : > { %s400_s20 = ssub.s32 %s2285_s28, %s2881_s18  ;;  %p1759_p6 = scmp.ge.s32.totalorder %s2289_s29, 1 }
  0x19   : > { %s2848_s1 = scalar_select %p2438_p4, 1, 0 }
  0x1a   : > { %p403_p7 = scmp.eq.s32.totalorder %s400_s20, 0  ;;  %p2445_p8 = por %p422_p5, %p421_p3 }
  0x1b   : > { %2849 = sst [smem:[#allocation23_spill]] %s2848_s1  ;;  %p457_p9 = scmp.lt.s32.totalorder %s2289_s29, 3 }
  0x1c   : > { %s2850_s21 = scalar_select %p2445_p8, 1, 0 }
  0x1d   : > { %s2451_s22 = scalar_select %p403_p7, %s2277_s26, %s405_s19  }
  0x1e   : > { %2851 = sst [smem:[#allocation24_spill]] %s2850_s21  ;;  %p2453_p10 = pnand %p1759_p6, %p457_p9 }
  0x1f   : > { %2852 = sst [smem:[#allocation25_spill]] %s2451_s22  ;;  %p2457_p11 = scmp.eq.s32.totalorder %s1757_s0, 0 }
  0x20   : > { %s2853_s23 = scalar_select %p2453_p10, 1, 0 }
  0x21   : > { %s2854_s24 = scalar_select %p2457_p11, 1, 0 }
  0x22   : > { %p1962_p12 = pneg %p2453_p10  ;;  %s2291_s30 = smov [#allocation8]  }
  0x23   : > { %s491_s20 = sshll.u32 %s2291_s30, 4  ;;  %s2292_s19 = smov [#allocation5]   ;;  %s492_s20 = int_to_ptr.vmem [resolvable:$true] %s491_s20 }
  0x24   : > { %p2465_p13 = pnand %p2457_p11, %p1962_p12  ;;  %s475_s28 = sshll.u32 %s2292_s19, 4  ;;  %s476_s28 = int_to_ptr.vmem [resolvable:$true] %s475_s28 }
  0x25   : > { %s2856_s6 = sld [smem:[#allocation28_spill]] }
  0x26   : > { %p2477_p1 = pneg %p2465_p13 }
  0x2b   : > { %s2087_s0 = scalar_lea.hbm %s2856_s6, 256 }
  0x2c   : > { %p2088_p0 = scmp.ne.s32.totalorder %s2856_s6, %s2087_s0  ;;  %p2094_p5 = scmp.lt.u32.totalorder %s2087_s0, %s2856_s6 }
  0x2e   : > { %p2090_p2 = pnand %p2477_p1, %p2088_p0 }
  0x30   : > { %p2091_p3 = pneg %p2090_p2 }
  0x32   : > { %p2096_p6 = pnand %p2094_p5, %p2091_p3 }
  0x34   : > { %2099 = shalt.err (!%p2096_p6)
}
  0x35   : > { %s2100_s26 = scalar_lea.vmem %s492_s20, 256  ;;  %p2108_p8 = scmp.lt.s32.totalorder %s492_s20, %s492_s20 }
  0x36   : > { %p2101_p7 = scmp.ne.s32.totalorder %s492_s20, %s2100_s26  ;;  %p2109_p4 = scmp.lt.s32.totalorder %s2100_s26, %s2100_s26 }
  0x38   : > { %p2103_p9 = pnand %p2101_p7, %p2477_p1  ;;  %p2110_p11 = por %p2109_p4, %p2108_p8 }
  0x3a   : > { %p2104_p12 = pneg %p2103_p9 }
  0x3c   : > { %p2111_p10 = pnand %p2110_p11, %p2104_p12 }
  0x3e   : > { %2114 = shalt.err (!%p2111_p10)
}
  0x3f   : > { %s2293_s29 = smov 64   ;;  %s2294_s21 = smov 4  }
  0x40   : > { %1968 = dma.hbm_to_vmem [thread:$0]  (!%p2465_p13), %s2856_s6, 256, %s492_s20, [#allocation9], %s2293_s29, %s2293_s29, %s2294_s21  }
  0x41   : > { %s2115_s0 = scalar_lea.hbm %s2807_s4, 256 }
  0x42   : > { %p2116_p4 = scmp.ne.s32.totalorder %s2807_s4, %s2115_s0  ;;  %p2122_p11 = scmp.lt.u32.totalorder %s2115_s0, %s2807_s4 }
  0x44   : > { %p2118_p8 = pnand %p2116_p4, %p2477_p1 }
  0x46   : > { %p2119_p10 = pneg %p2118_p8 }
  0x48   : > { %p2124_p0 = pnand %p2122_p11, %p2119_p10 }
  0x4a   : > { %2127 = shalt.err (!%p2124_p0)
}
  0x4b   : > { %s2128_s15 = scalar_lea.vmem %s476_s28, 256  ;;  %p2136_p6 = scmp.lt.s32.totalorder %s476_s28, %s476_s28 }
  0x4c   : > { %p2129_p2 = scmp.ne.s32.totalorder %s476_s28, %s2128_s15  ;;  %p2137_p7 = scmp.lt.s32.totalorder %s2128_s15, %s2128_s15 }
  0x4e   : > { %p2131_p3 = pnand %p2129_p2, %p2477_p1  ;;  %p2138_p9 = por %p2137_p7, %p2136_p6 }
  0x50   : > { %p2132_p5 = pneg %p2131_p3 }
  0x52   : > { %p2139_p12 = pnand %p2138_p9, %p2132_p5 }
  0x54   : > { %2142 = shalt.err (!%p2139_p12)
}
  0x55   : > { %1965 = dma.hbm_to_vmem [thread:$0]  (!%p2465_p13), %s2807_s4, 256, %s476_s28, [#allocation6], %s2293_s29, %s2293_s29, %s2294_s21  }
  0x56   : > { %s2295_s1 = smov [#allocation10]   ;;  %s2143_s19 = scalar_lea.hbm %s2811_s8, 256 }
  0x57   : > { %s507_s20 = sshll.u32 %s2295_s1, 4  ;;  %p2144_p4 = scmp.ne.s32.totalorder %s2811_s8, %s2143_s19  ;;  %s508_s20 = int_to_ptr.vmem [resolvable:$true] %s507_s20 }
  0x58   : > { %p2150_p11 = scmp.lt.u32.totalorder %s2143_s19, %s2811_s8 }
  0x59   : > { %p2146_p8 = pnand %p2144_p4, %p2477_p1 }
  0x5b   : > { %p2147_p10 = pneg %p2146_p8 }
  0x5d   : > { %p2152_p0 = pnand %p2150_p11, %p2147_p10 }
  0x5f   : > { %2155 = shalt.err (!%p2152_p0)
}
  0x60   : > { %s2156_s28 = scalar_lea.vmem %s508_s20, 256  ;;  %p2164_p6 = scmp.lt.s32.totalorder %s508_s20, %s508_s20 }
  0x61   : > { %p2157_p2 = scmp.ne.s32.totalorder %s508_s20, %s2156_s28  ;;  %p2165_p7 = scmp.lt.s32.totalorder %s2156_s28, %s2156_s28 }
  0x63   : > { %p2159_p3 = pnand %p2157_p2, %p2477_p1  ;;  %p2166_p9 = por %p2165_p7, %p2164_p6 }
  0x65   : > { %p2160_p5 = pneg %p2159_p3 }
  0x67   : > { %p2167_p12 = pnand %p2166_p9, %p2160_p5 }
  0x69   : > { %2170 = shalt.err (!%p2167_p12)
}
  0x6a   : > { %1971 = dma.hbm_to_vmem [thread:$0]  (!%p2465_p13), %s2811_s8, 256, %s508_s20, [#allocation9], %s2293_s29, %s2293_s29, %s2294_s21  }
  0x6b   : > { %p2858_p4 = scmp.ne.s32.totalorder %s2853_s23, 0 }
  0x6c   : > { %p2859_p1 = scmp.ne.s32.totalorder (!%p2858_p4), %s2854_s24, 0 }
  0x6d   : > { %561 = sbr.rel (%p2858_p4) target bundleno = 2686 (0xa7e), region = 84 }
  0x74   : > { %2252 = dma.done.wait (%p2859_p1), [#allocation6], 256  }
  0x75   : > { %2254 = vsyncadd (%p2859_p1), [#allocation6], 4294967040 }
  0x76   : > { %2256 = dma.done.wait (%p2859_p1), [#allocation9], 512  }
  0x77   : > { %2258 = vsyncadd (%p2859_p1), [#allocation9], 4294966784  ;;  %p632_p8 = scmp.lt.s32.totalorder %s2281_s27, 1  ;;  %v2296_v0 = vmov 0.0   ;;  %vm2297_vm0 = vmmov 0   ;;  %s2860_s29 = sld [smem:[#allocation27_spill]] }
  0x78   : > { %1854 = vmatprep.subr.bf16.mxu1 %v2296_v0  ;;  %1858 = vmatprep.mubr.msk.bf16.mxu1 %vm2297_vm0, %v2296_v0  ;;  %v2049_v1 = vld [vmem:[#allocation5] sm:$0xff]   ;;  %v2050_v2 = vld [vmem:[#allocation5 + $0x8] sm:$0xff]   ;;  %vm673_vm1 = vcmask 261120   ;;  %v2051_v4 = vld [vmem:[%s2805_s2] sm:$0xff]   ;;  %s2861_s22 = sld [smem:[#allocation26_spill]]  ;;  %vm718_vm2 = vcmask 257024  }
  0x79   : > { %s633_s18 = scalar_select %p632_p8, %s2281_s27, 1  ;;  %1870 = vmatprep.subr.bf16.mxu0 %v2296_v0  ;;  %1872 = vmatprep.mubr.msk.bf16.mxu0 %vm2297_vm0, %v2296_v0  ;;  %v2052_v7 = vld [vmem:[%s2805_s2 + $0x8] sm:$0xff]   ;;  %v1772_v9 = vld [vmem:[%s2808_s5] ss:$0 sm:$0xff]  ;;  %vm799_vm3 = vcmask 64512   ;;  %vm864_vm4 = vcmask 1043456  }
  0x7a   : > { %1855 = vmatpush3.bf16.msra.mxu1 %v2049_v1  ;;  %v1777_v16 = vld [vmem:[%s2806_s3] ss:$0 sm:$0xff]  ;;  %s2300_s30 = smov 104   ;;  %s2301_s24 = smov 96   ;;  %vm1034_vm5 = vcmask 130112   ;;  %vm1154_vm6 = vcmask 195712  }
  0x7b   : > { %s1770_s23 = sshll.u32 %s633_s18, 3  ;;  %1856 = vmatprep.subr.bf16.mxu1 %v2296_v0  ;;  %s2298_s18 = smov 112   ;;  %vm1274_vm7 = vcmask 261312   ;;  %vm1490_vm10 = vcmask 523264  }
  0x7c   : > { %s2302_s1 = smov 8   ;;  %s2303_s20 = smov 16  }
  0x7d   : > { %s642_s21 = scalar_lea.vmem %s2860_s29, %s1770_s23  ;;  %s2633_s29 = sand.u32 1, %s2273_s25  }
  0x7e   : > { %v648_v3 = vld [vmem:[%s642_s21] sm:$0xff]  ;;  %1857 = vmatpush3.bf16.msra.mxu1 %v2050_v2  ;;  %s638_s19 = scalar_lea.vmem %s2861_s22, %s1770_s23  ;;  %s2299_s23 = smov 120  }
  0x7f   : > { %v649_v5 = vpack.c.bf16 %v648_v3, %v648_v3  ;;  %1862 = vmatprep.subr.bf16.mxu1 %v2296_v0  ;;  %v2568_v6 = vld [vmem:[%s638_s19] sm:$0xff]  ;;  %s1769_s21 = sshll.u32 %s2633_s29, 5  ;;  %s2304_s16 = smov 24  }
  0x80   : > { %v728_v8 = vpack.c.bf16 %v2568_v6, %v2568_v6  ;;  %s2637_s17 = scalar_lea.vmem [#allocation12], %s1769_s21  ;;  %s2862_s26 = sld [smem:[#allocation23_spill]] }
  0x81   : > { %1859 = vmatmul.mubr.msk.bf16.vlgmr.msra.gmra.mrb[0].mxu1 %vm673_vm1, %v649_v5  ;;  %s1606_s15 = sshll.u32 %s2637_s17, 4  ;;  %s1820_s28 = sshll.u32 %s2281_s27, 9  ;;  %s2711_s15 = int_to_ptr.vmem [resolvable:$true] %s1606_s15 }
  0x82   : > { %1863 = vmatpush3.bf16.msra.mxu1 %v2051_v4  ;;  %1866 = vmatprep.mubr.msk.bf16.mxu1 %vm2297_vm0, %v2296_v0  ;;  %s2305_s21 = smov [#allocation12]  }
  0x83   : > { %1864 = vmatprep.subr.bf16.mxu1 %v2296_v0 }
  0x86   : > { %1865 = vmatpush3.bf16.msra.mxu1 %v2052_v7  ;;  %p2864_p10 = scmp.ne.s32.totalorder %s2862_s26, 0 }
  0x87   : > { %1876 = vmatprep.subr.bf16.mxu1 %v2296_v0 }
  0x89   : > { %1867 = vmatmul.mubr.msk.bf16.vlgmr.msra.gmra.mrb[4].mxu1 %vm673_vm1, %v728_v8 }
  0x8a   : > { %1878 = vmatprep.mubr.msk.bf16.mxu1 %vm2297_vm0, %v2296_v0 }
 0x154   : > { %v711_v10 = vpop.f32.mrb[0].mxu1 }
 0x155   : > { %v712_v11 = vadd.f32 %v1772_v9, %v711_v10  ;;  %v1860_v12 = vpop.f32.mrb[1].mxu1 }
 0x156   : > { %v714_v13 = vpop.f32.mrb[2].mxu1 }
 0x157   : > { %v2585_v14 = vpack.c.bf16 %v712_v11, %v712_v11  ;;  %v1861_v15 = vpop.f32.mrb[3].mxu1 }
 0x159   : > { %719 = vst.msk [vmem:[#allocation2] sm:$0xf] %vm718_vm2, %v2585_v14 }
 0x15c   : > { %v790_v17 = vpop.f32.mrb[4].mxu1 }
 0x15d   : > { %v1868_v18 = vpop.f32.mrb[5].mxu1  ;;  %v791_v20 = vadd.f32 %v1777_v16, %v790_v17 }
 0x15e   : > { %v793_v19 = vpop.f32.mrb[6].mxu1 }
 0x15f   : > { %v1869_v21 = vpop.f32.mrb[7].mxu1  ;;  %v798_v25 = vpack.c.bf16 %v791_v20, %v791_v20 }
 0x160   : > { %v796_v22 = vld [vmem:[#allocation2] sm:$0xf] }
 0x161   : > { %v804_v23 = vsel %vm799_vm3, %v796_v22, 0  ;;  %v1783_v24 = vcombine.low %v796_v22, %v796_v22 }
 0x162   : > { %1871 = vmatpush3.bf16.xpose.msra.mxu0 %v804_v23 }
 0x163   : > { %1038 = vrot.lane.b32.xlu1 %v1783_v24, %s2298_s18  ;;  %915 = vrot.lane.b32.xlu0 %v1783_v24, %s2299_s23 }
 0x164   : > { %1882 = vmatprep.subr.bf16.mxu0 %v2296_v0 }
 0x167   : > { %1036 = vrot.lane.b32.xlu1 %v798_v25, %s2298_s18  ;;  %910 = vrot.lane.b32.xlu0 %v798_v25, %s2299_s23 }
 0x169   : > { %1873 = vmatmul.mubr.msk.bf16.vlgmr.msra.gmra.mrb[0].mxu0 %vm799_vm3, %v798_v25 }
 0x16a   : > { %1884 = vmatprep.mubr.msk.bf16.mxu0 %vm2297_vm0, %v2296_v0 }
 0x16b   : > { %1156 = vrot.lane.b32.xlu1 %v798_v25, %s2300_s30  ;;  %1158 = vrot.lane.b32.xlu0 %v1783_v24, %s2300_s30 }
 0x1d5   : > { %v916_v26 = vpop.permute.xlu0 %915  ;;  %v1039_v28 = vpop.permute.xlu1 %1038 }
 0x1d6   : > { %v921_v27 = vsel %vm799_vm3, %v916_v26, 0  ;;  %v1044_v30 = vsel %vm799_vm3, %v1039_v28, 0 }
 0x1d7   : > { %1883 = vmatpush3.bf16.xpose.msra.mxu0 %v921_v27 }
 0x1d8   : > { %1894 = vmatprep.subr.bf16.mxu0 %v2296_v0 }
 0x1d9   : > { %v911_v29 = vpop.permute.xlu0 %910  ;;  %v1037_v32 = vpop.permute.xlu1 %1036 }
 0x1dd   : > { %v1159_v31 = vpop.permute.xlu0 %1158  ;;  %v1157_v34 = vpop.permute.xlu1 %1156 }
 0x1de   : > { %1885 = vmatmul.mubr.msk.bf16.vlgmr.msra.gmra.mrb[4].mxu0 %vm799_vm3, %v911_v29  ;;  %v1164_v33 = vsel %vm799_vm3, %v1159_v31, 0 }
 0x1df   : > { %1895 = vmatpush3.bf16.xpose.msra.mxu0 %v1044_v30  ;;  %1896 = vmatprep.mubr.msk.bf16.mxu0 %vm2297_vm0, %v2296_v0 }
 0x1e0   : > { %1906 = vmatprep.subr.bf16.mxu0 %v2296_v0 }
 0x1e6   : > { %1897 = vmatmul.mubr.msk.bf16.vlgmr.msra.gmra.mrb[8].mxu0 %vm799_vm3, %v1037_v32 }
 0x1e7   : > { %1907 = vmatpush3.bf16.xpose.msra.mxu0 %v1164_v33  ;;  %1908 = vmatprep.mubr.msk.bf16.mxu0 %vm2297_vm0, %v2296_v0 }
 0x1e8   : > { %1918 = vmatprep.subr.bf16.mxu0 %v2296_v0 }
 0x1ee   : > { %1909 = vmatmul.mubr.msk.bf16.vlgmr.msra.gmra.mrb[12].mxu0 %vm799_vm3, %v1157_v34 }
 0x1ef   : > { %1922 = vmatprep.mubr.msk.bf16.mxu0 %vm2297_vm0, %v2296_v0 }
 0x23c   : > { %v840_v35 = vpop.f32.mrb[0].mxu0 }
 0x23d   : > { %v846_v36 = vmul.f32 0.35355338, %v840_v35  ;;  %v1874_v37 = vpop.f32.mrb[1].mxu0 }
 0x23e   : > { %v843_v38 = vpop.f32.mrb[2].mxu0 }
 0x23f   : > { %v847_v39 = vmax.f32 %v846_v36, -6000.0  ;;  %v1875_v40 = vpop.f32.mrb[3].mxu0 }
 0x241   : > { %v848_v41 = vsel %vm799_vm3, %v847_v39, -inf }
 0x242   : > { %849 = vmax.xlane.f32.xlu0 %v848_v41 }
 0x2b1   : > { %v957_v42 = vpop.f32.mrb[4].mxu0 }
 0x2b2   : > { %v963_v43 = vmul.f32 0.35355338, %v957_v42  ;;  %v1886_v44 = vpop.f32.mrb[5].mxu0 }
 0x2b3   : > { %v960_v45 = vpop.f32.mrb[6].mxu0 }
 0x2b4   : > { %v964_v46 = vmax.f32 %v963_v43, -6000.0  ;;  %v1887_v47 = vpop.f32.mrb[7].mxu0 }
 0x2b6   : > { %v965_v48 = vsel %vm799_vm3, %v964_v46, -inf }
 0x2b7   : > { %966 = vmax.xlane.f32.xlu1 %v965_v48 }
 0x2b9   : > { %v1080_v49 = vpop.f32.mrb[8].mxu0 }
 0x2ba   : > { %v1086_v50 = vmul.f32 0.35355338, %v1080_v49  ;;  %v1898_v51 = vpop.f32.mrb[9].mxu0 }
 0x2bb   : > { %v1083_v52 = vpop.f32.mrb[10].mxu0 }
 0x2bc   : > { %v1087_v53 = vmax.f32 %v1086_v50, -6000.0  ;;  %v1899_v54 = vpop.f32.mrb[11].mxu0 }
 0x2be   : > { %v1088_v55 = vsel %vm799_vm3, %v1087_v53, -inf }
 0x2bf   : > { %1089 = vmax.xlane.f32.xlu0 %v1088_v55  ;;  %v2055_v55 = vld [vmem:[#allocation8] sm:$0xff]  }
 0x2c0   : > { %1919 = vmatpush3.bf16.msra.mxu0 %v2055_v55 }
 0x2c1   : > { %v1200_v56 = vpop.f32.mrb[12].mxu0  ;;  %1920 = vmatprep.subr.bf16.mxu0 %v2296_v0 }
 0x2c2   : > { %v1206_v57 = vmul.f32 0.35355338, %v1200_v56  ;;  %v1910_v58 = vpop.f32.mrb[13].mxu0  ;;  %v2056_v56 = vld [vmem:[#allocation8 + $0x8] sm:$0xff]  }
 0x2c3   : > { %v1203_v59 = vpop.f32.mrb[14].mxu0 }
 0x2c4   : > { %v1207_v60 = vmax.f32 %v1206_v57, -6000.0  ;;  %v1911_v61 = vpop.f32.mrb[15].mxu0  ;;  %1921 = vmatpush3.bf16.msra.mxu0 %v2056_v56 }
 0x2c5   : > { %1934 = vmatprep.subr.bf16.mxu0 %v2296_v0 }
 0x2c6   : > { %v1208_v62 = vsel %vm799_vm3, %v1207_v60, -inf }
 0x2c7   : > { %1209 = vmax.xlane.f32.xlu0 %v1208_v62 }
 0x2c8   : > { %723 = vrot.lane.b32.xlu1 %v2585_v14, %s2301_s24  ;;  %s2171_s24 = scalar_lea.vmem %s2711_s15, 512 }
 0x2c9   : > { %p2172_p13 = scmp.ne.s32.totalorder %s2711_s15, %s2171_s24 }
 0x2cb   : > { %p2173_p11 = pnand %p2172_p13, %p2864_p10 }
 0x2cd   : > { %p2174_p0 = pneg %p2173_p11 }
 0x2cf   : > { %v850_v63 = vpop.xlane.xlu0 %849 }
 0x2d0   : > { %v851_v1 = vsub.f32 %v847_v39, %v850_v63 }
 0x2d2   : > { %v852_v2 = vmul.f32 1.442695, %v851_v1 }
 0x2d4   : > { %2063 = vpow2.f32 %v852_v2 }
 0x2de   : > { %v2064_v3 = vpop.eup %2063 }
 0x2df   : > { %v854_v4 = vsel %vm799_vm3, %v2064_v3, 0.0 }
 0x2e0   : > { %855 = vadd.xlane.f32.xlu0 %v854_v4 }
 0x344   : > { %v967_v5 = vpop.xlane.xlu1 %966 }
 0x345   : > { %v968_v7 = vsub.f32 %v964_v46, %v967_v5 }
 0x347   : > { %v969_v8 = vmul.f32 1.442695, %v968_v7 }
 0x348   : > { %v724_v9 = vpop.permute.xlu1 %723 }
 0x349   : > { %2065 = vpow2.f32 %v969_v8  ;;  %726 = vst.msk [vmem:[#allocation3] sm:$0xf] %vm718_vm2, %v724_v9  ;;  %v1794_v8 = vld [vmem:[%s2810_s7] ss:$0 sm:$0xff] }
 0x34c   : > { %v1090_v10 = vpop.xlane.xlu0 %1089 }
 0x34d   : > { %v1091_v11 = vsub.f32 %v1087_v53, %v1090_v10 }
 0x34f   : > { %v1092_v12 = vmul.f32 1.442695, %v1091_v11 }
 0x350   : > { %v797_v13 = vld [vmem:[#allocation3] sm:$0xf] }
 0x351   : > { %2067 = vpow2.f32 %v1092_v12  ;;  %v866_v14 = vsel %vm864_vm4, %v797_v13, 0  ;;  %v1786_v15 = vcombine.low %v797_v13, %v797_v13 }
 0x352   : > { %1877 = vmatpush3.bf16.msra.mxu1 %v866_v14 }
 0x353   : > { %v2066_v16 = vpop.eup %2065  ;;  %982 = vrot.lane.b32.xlu1 %v1786_v15, %s2299_s23  ;;  %1888 = vmatprep.subr.bf16.mxu1 %v2296_v0 }
 0x354   : > { %v1210_v17 = vpop.xlane.xlu0 %1209  ;;  %v971_v18 = vsel %vm799_vm3, %v2066_v16, 0.0 }
 0x355   : > { %v1211_v19 = vsub.f32 %v1207_v60, %v1210_v17  ;;  %972 = vadd.xlane.f32.xlu0 %v971_v18 }
 0x357   : > { %v1212_v20 = vmul.f32 1.442695, %v1211_v19  ;;  %1222 = vrot.lane.b32.xlu1 %v1786_v15, %s2300_s30  ;;  %s1578_s30 = scalar_lea.sflag [#allocation13], %s2633_s29 }
 0x359   : > { %2069 = vpow2.f32 %v1212_v20 }
 0x35b   : > { %v2068_v21 = vpop.eup %2067 }
 0x35c   : > { %v1094_v22 = vsel %vm799_vm3, %v2068_v21, 0.0 }
 0x35d   : > { %1095 = vadd.xlane.f32.xlu0 %v1094_v22  ;;  %v2058_v22 = vld [vmem:[#allocation10 + $0x8] sm:$0xff]  }
 0x363   : > { %v2070_v23 = vpop.eup %2069 }
 0x364   : > { %v1214_v24 = vsel %vm799_vm3, %v2070_v23, 0.0 }
 0x365   : > { %1215 = vadd.xlane.f32.xlu0 %v1214_v24 }
 0x36d   : > { %v856_v25 = vpop.xlane.xlu0 %855 }
 0x36e   : > { %2071 = vrcp.f32 %v856_v25 }
 0x378   : > { %v2072_v26 = vpop.eup %2071 }
 0x379   : > { %v858_v27 = vmul.f32 %v2072_v26, %v2064_v3 }
 0x37b   : > { %1102 = vrot.lane.b32.xlu0 %v1786_v15, %s2298_s18  ;;  %v860_v28 = vpack.c.bf16 %v858_v27, %v858_v27  ;;  %859 = vst.msk [vmem:[%s2637_s17] sm:$0xff] %vm799_vm3, %v858_v27  ;;  %s2863_s18 = sld [smem:[#allocation32_spill]] }
 0x37d   : > { %1879 = vmatmul.mubr.msk.bf16.vlgmr.msra.gmra.mrb[8].mxu1 %vm799_vm3, %v860_v28 }
 0x37e   : > { %1890 = vmatprep.mubr.msk.bf16.mxu1 %vm2297_vm0, %v2296_v0 }
 0x381   : > { %s2716_s23 = scalar_lea.hbm %s2863_s18, %s1820_s28 }
 0x3c5   : > { %v983_v29 = vpop.permute.xlu1 %982 }
 0x3c6   : > { %v988_v30 = vsel %vm864_vm4, %v983_v29, 0 }
 0x3c7   : > { %1889 = vmatpush3.bf16.msra.mxu1 %v988_v30 }
 0x3c8   : > { %1900 = vmatprep.subr.bf16.mxu1 %v2296_v0 }
 0x3c9   : > { %v1223_v41 = vpop.permute.xlu1 %1222 }
 0x3ca   : > { %v1228_v43 = vsel %vm864_vm4, %v1223_v41, 0  ;;  %v1800_v41 = vld [vmem:[%s2812_s9] ss:$0 sm:$0xff] }
 0x3e2   : > { %v973_v31 = vpop.xlane.xlu0 %972 }
 0x3e3   : > { %2073 = vrcp.f32 %v973_v31 }
 0x3ea   : > { %v1096_v32 = vpop.xlane.xlu0 %1095 }
 0x3eb   : > { %2075 = vrcp.f32 %v1096_v32 }
 0x3ed   : > { %v2074_v33 = vpop.eup %2073 }
 0x3ee   : > { %v975_v34 = vmul.f32 %v2074_v33, %v2066_v16  ;;  %v1798_v33 = vld [vmem:[%s2815_s12] ss:$0 sm:$0xff] }
 0x3f0   : > { %v978_v35 = vpack.c.bf16 %v975_v34, %v975_v34  ;;  %1785 = vst.msk [vmem:[%s2637_s17 + $0x8] sm:$0xff] %vm799_vm3, %v975_v34 }
 0x3f2   : > { %1891 = vmatmul.mubr.msk.bf16.vlgmr.msra.gmra.mrb[12].mxu1 %vm799_vm3, %v978_v35  ;;  %v1216_v36 = vpop.xlane.xlu0 %1215  ;;  %v1799_v35 = vld [vmem:[%s2816_s13] ss:$0 sm:$0xff] }
 0x3f3   : > { %2077 = vrcp.f32 %v1216_v36  ;;  %1902 = vmatprep.mubr.msk.bf16.mxu1 %vm2297_vm0, %v2296_v0 }
 0x3f5   : > { %v2076_v37 = vpop.eup %2075 }
 0x3f6   : > { %v1098_v38 = vmul.f32 %v2076_v37, %v2068_v21  ;;  %v1103_v39 = vpop.permute.xlu0 %1102  ;;  %v2057_v21 = vld [vmem:[#allocation10] sm:$0xff]  }
 0x3f7   : > { %v1108_v40 = vsel %vm864_vm4, %v1103_v39, 0  ;;  %v2061_v39 = vld [vmem:[%s2813_s10 + $0x10] sm:$0xff]  }
 0x3f8   : > { %1901 = vmatpush3.bf16.msra.mxu1 %v1108_v40  ;;  %v1101_v42 = vpack.c.bf16 %v1098_v38, %v1098_v38  ;;  %1789 = vst.msk [vmem:[%s2637_s17 + $0x10] sm:$0xff] %vm799_vm3, %v1098_v38  ;;  %v2062_v40 = vld [vmem:[%s2813_s10 + $0x18] sm:$0xff]  }
 0x3f9   : > { %1912 = vmatprep.subr.bf16.mxu1 %v2296_v0 }
 0x3fb   : > { %1903 = vmatmul.mubr.msk.bf16.vlgmr.msra.gmra.mrb[16].mxu1 %vm799_vm3, %v1101_v42 }
 0x3fc   : > { %1913 = vmatpush3.bf16.msra.mxu1 %v1228_v43  ;;  %1914 = vmatprep.mubr.msk.bf16.mxu1 %vm2297_vm0, %v2296_v0 }
 0x3fd   : > { %v2078_v44 = vpop.eup %2077  ;;  %1926 = vmatprep.subr.bf16.mxu1 %v2296_v0 }
 0x3fe   : > { %v1218_v45 = vmul.f32 %v2078_v44, %v2070_v23  ;;  %v2060_v23 = vld [vmem:[%s2813_s10 + $0x8] sm:$0xff]  }
 0x400   : > { %v1221_v46 = vpack.c.bf16 %v1218_v45, %v1218_v45  ;;  %1792 = vst.msk [vmem:[%s2637_s17 + $0x18] sm:$0xff] %vm799_vm3, %v1218_v45 }
 0x403   : > { %1915 = vmatmul.mubr.msk.bf16.vlgmr.msra.gmra.mrb[20].mxu1 %vm799_vm3, %v1221_v46 }
 0x404   : > { %1930 = vmatprep.mubr.msk.bf16.mxu1 %vm2297_vm0, %v2296_v0  ;;  %1927 = vmatpush3.bf16.msra.mxu1 %v2057_v21 }
 0x405   : > { %1928 = vmatprep.subr.bf16.mxu1 %v2296_v0 }
 0x408   : > { %1929 = vmatpush3.bf16.msra.mxu1 %v2058_v22 }
 0x450   : > { %v902_v47 = vpop.f32.mrb[8].mxu1 }
 0x451   : > { %908 = vst.msk [vmem:[#allocation4] sm:$0xff] %vm799_vm3, %v902_v47  ;;  %v1880_v48 = vpop.f32.mrb[9].mxu1 }
 0x452   : > { %v905_v49 = vpop.f32.mrb[10].mxu1 }
 0x453   : > { %v1881_v50 = vpop.f32.mrb[11].mxu1 }
 0x4c5   : > { %v1024_v51 = vpop.f32.mrb[12].mxu1 }
 0x4c6   : > { %1031 = vrot.lane.b32.xlu1 %v1024_v51, %s2302_s1  ;;  %v1892_v52 = vpop.f32.mrb[13].mxu1 }
 0x4c7   : > { %v1027_v53 = vpop.f32.mrb[14].mxu1 }
 0x4c8   : > { %v1893_v54 = vpop.f32.mrb[15].mxu1 }
 0x4ce   : > { %v1144_v57 = vpop.f32.mrb[16].mxu1 }
 0x4cf   : > { %1151 = vrot.lane.b32.xlu1 %v1144_v57, %s2303_s20  ;;  %v1904_v58 = vpop.f32.mrb[17].mxu1  ;;  %s2175_s20 = sshll.u32 %s2305_s21, 4  ;;  %s2176_s20 = int_to_ptr.vmem [resolvable:$false] %s2175_s20 }
 0x4d0   : > { %v1147_v59 = vpop.f32.mrb[18].mxu1  ;;  %s2177_s17 = scalar_lea.vmem %s2176_s20, 1024  ;;  %p2178_p2 = scmp.lt.s32.totalorder %s2711_s15, %s2176_s20 }
 0x4d1   : > { %v1905_v60 = vpop.f32.mrb[19].mxu1  ;;  %p2179_p3 = scmp.lt.s32.totalorder %s2177_s17, %s2171_s24 }
 0x4d3   : > { %p2180_p5 = por %p2179_p3, %p2178_p2 }
 0x4d5   : > { %p2181_p6 = pnand %p2180_p5, %p2174_p0 }
 0x4d6   : > { %v1264_v61 = vpop.f32.mrb[20].mxu1 }
 0x4d7   : > { %1271 = vrot.lane.b32.xlu1 %v1264_v61, %s2304_s16  ;;  %v1916_v62 = vpop.f32.mrb[21].mxu1 }
 0x4d8   : > { %v1267_v63 = vpop.f32.mrb[22].mxu1 }
 0x4d9   : > { %v1917_v1 = vpop.f32.mrb[23].mxu1 }
 0x538   : > { %v1032_v2 = vpop.permute.xlu1 %1031 }
 0x539   : > { %1035 = vst.msk [vmem:[#allocation4] sm:$0xff] %vm1034_vm5, %v1032_v2 }
 0x541   : > { %v1152_v3 = vpop.permute.xlu1 %1151 }
 0x542   : > { %1155 = vst.msk [vmem:[#allocation4] sm:$0xff] %vm1154_vm6, %v1152_v3 }
 0x549   : > { %v1272_v4 = vpop.permute.xlu1 %1271 }
 0x54a   : > { %1275 = vst.msk [vmem:[#allocation4] sm:$0xff] %vm1274_vm7, %v1272_v4 }
 0x551   : > { %v1276_v5 = vld [vmem:[#allocation4] sm:$0xff] }
 0x552   : > { %v1277_v7 = vpack.c.bf16 %v1276_v5, %v1276_v5 }
 0x554   : > { %1923 = vmatmul.mubr.msk.bf16.vlgmr.msra.gmra.mrb[16].mxu0 %vm673_vm1, %v1277_v7 }
 0x555   : > { %1942 = vmatprep.mubr.msk.bf16.mxu0 %vm2297_vm0, %v2296_v0 }
 0x627   : > { %v1338_v9 = vpop.f32.mrb[16].mxu0 }
 0x628   : > { %v1339_v10 = vadd.f32 %v1794_v8, %v1338_v9  ;;  %v1924_v11 = vpop.f32.mrb[17].mxu0 }
 0x629   : > { %v1341_v12 = vpop.f32.mrb[18].mxu0 }
 0x62a   : > { %v1925_v13 = vpop.f32.mrb[19].mxu0  ;;  %v1344_v14 = vadd.f32 %v1339_v10, %v2568_v6  ;;  %v2059_v6 = vld [vmem:[%s2813_s10] sm:$0xff]  }
 0x62b   : > { %1935 = vmatpush3.bf16.msra.mxu0 %v2059_v6 }
 0x62c   : > { %v1347_v15 = vsel %vm673_vm1, %v1344_v14, 0.0  ;;  %1936 = vmatprep.subr.bf16.mxu0 %v2296_v0 }
 0x62d   : > { %1348 = vadd.xlane.f32.xlu1 %v1347_v15 }
 0x62f   : > { %1937 = vmatpush3.bf16.msra.mxu0 %v2060_v23 }
 0x630   : > { %1938 = vmatprep.subr.bf16.mxu0 %v2296_v0 }
 0x633   : > { %1939 = vmatpush3.bf16.msra.mxu0 %v2061_v39 }
 0x634   : > { %1940 = vmatprep.subr.bf16.mxu0 %v2296_v0  ;;  %v1804_v0 = vld [vmem:[%s2814_s11] ss:$0 sm:$0xff] }
 0x637   : > { %1941 = vmatpush3.bf16.msra.mxu0 %v2062_v40 }
 0x6ba   : > { %v1349_v16 = vpop.xlane.xlu1 %1348 }
 0x6bb   : > { %v1351_v17 = vmul.f32 0.03125, %v1349_v16 }
 0x6bd   : > { %v1352_v18 = vsub.f32 %v1344_v14, %v1351_v17 }
 0x6bf   : > { %v1353_v19 = vmul.f32 %v1352_v18, %v1352_v18 }
 0x6c1   : > { %v1354_v20 = vsel %vm673_vm1, %v1353_v19, 0.0 }
 0x6c2   : > { %1355 = vadd.xlane.f32.xlu0 %v1354_v20 }
 0x74f   : > { %v1356_v24 = vpop.xlane.xlu0 %1355 }
 0x750   : > { %v1357_v25 = vmul.f32 0.032258064, %v1356_v24 }
 0x752   : > { %2079 = vrsqrt.f32 %v1357_v25  ;;  %vm1360_vm8 = vcmp.eq.f32.partialorder %v1357_v25, inf  ;;  %v1363_v28 = vand.u32 2147483648, %v1357_v25  ;;  %vm1362_vm9 = vcmp.eq.f32.partialorder %v1357_v25, 0.0 }
 0x75c   : > { %v2080_v26 = vpop.eup %2079 }
 0x75d   : > { %v1359_v27 = vmul.f32 %v2080_v26, %v1357_v25 }
 0x75f   : > { %v1361_v29 = vsel %vm1360_vm8, %v1357_v25, %v1359_v27 }
 0x760   : > { %v1364_v30 = vsel %vm1362_vm9, %v1363_v28, %v1361_v29 }
 0x761   : > { %v1365_v31 = vadd.f32 1e-06, %v1364_v30 }
 0x763   : > { %2081 = vrcp.f32 %v1365_v31 }
 0x76d   : > { %v2082_v32 = vpop.eup %2081 }
 0x76e   : > { %v1367_v34 = vmul.f32 %v2082_v32, %v1352_v18 }
 0x770   : > { %v1374_v36 = vmul.f32 %v1798_v33, %v1367_v34 }
 0x772   : > { %v1381_v37 = vadd.f32 %v1799_v35, %v1374_v36 }
 0x774   : > { %v1382_v38 = vpack.c.bf16 %v1381_v37, %v1381_v37 }
 0x776   : > { %1931 = vmatmul.mubr.msk.bf16.vlgmr.msra.gmra.mrb[24].mxu1 %vm673_vm1, %v1382_v38 }
 0x849   : > { %v1443_v42 = vpop.f32.mrb[24].mxu1 }
 0x84a   : > { %v1444_v43 = vadd.f32 %v1800_v41, %v1443_v42  ;;  %v1932_v44 = vpop.f32.mrb[25].mxu1 }
 0x84b   : > { %v1446_v45 = vpop.f32.mrb[26].mxu1 }
 0x84c   : > { %v1449_v46 = vmax.f32 %v1444_v43, 0.0  ;;  %v1933_v47 = vpop.f32.mrb[27].mxu1 }
 0x84e   : > { %v1450_v48 = vpack.c.bf16 %v1449_v46, %v1449_v46 }
 0x850   : > { %1943 = vmatmul.mubr.msk.bf16.vlgmr.msra.gmra.mrb[20].mxu0 %vm1490_vm10, %v1450_v48 }
 0x923   : > { %v1528_v49 = vpop.f32.mrb[20].mxu0 }
 0x924   : > { %v1529_v50 = vadd.f32 %v1804_v0, %v1528_v49  ;;  %v1944_v51 = vpop.f32.mrb[21].mxu0 }
 0x925   : > { %v1531_v52 = vpop.f32.mrb[22].mxu0 }
 0x926   : > { %v1945_v53 = vpop.f32.mrb[23].mxu0  ;;  %v1534_v54 = vadd.f32 %v1529_v50, %v1381_v37 }
 0x928   : > { %v1537_v55 = vsel %vm673_vm1, %v1534_v54, 0.0 }
 0x929   : > { %1538 = vadd.xlane.f32.xlu0 %v1537_v55 }
 0x9b6   : > { %v1539_v56 = vpop.xlane.xlu0 %1538 }
 0x9b7   : > { %v1540_v57 = vmul.f32 0.03125, %v1539_v56 }
 0x9b9   : > { %v1541_v58 = vsub.f32 %v1534_v54, %v1540_v57 }
 0x9bb   : > { %v1542_v59 = vmul.f32 %v1541_v58, %v1541_v58 }
 0x9bd   : > { %v1543_v60 = vsel %vm673_vm1, %v1542_v59, 0.0 }
 0x9be   : > { %1544 = vadd.xlane.f32.xlu1 %v1543_v60 }
 0x9bf   : > { %2184 = shalt.err (!%p2181_p6)
}
 0x9c0   : > { %s2185_s16 = scalar_lea.hbm %s2716_s23, 512  ;;  %s2189_s0 = scalar_lea.hbm %s2863_s18, 1024 }
 0x9c1   : > { %p2186_p7 = scmp.ne.s32.totalorder %s2716_s23, %s2185_s16  ;;  %p2190_p4 = scmp.lt.u32.totalorder %s2716_s23, %s2863_s18 }
 0x9c2   : > { %p2191_p1 = scmp.lt.u32.totalorder %s2189_s0, %s2185_s16  ;;  %p2193_p13 = scmp.lt.u32.totalorder %s2185_s16, %s2716_s23 }
 0x9c3   : > { %p2187_p9 = pnand %p2186_p7, %p2864_p10 }
 0x9c4   : > { %p2192_p8 = por %p2191_p1, %p2190_p4 }
 0x9c5   : > { %p2188_p12 = pneg %p2187_p9 }
 0x9c6   : > { %p2194_p11 = por %p2193_p13, %p2192_p8 }
 0x9c8   : > { %p2195_p0 = pnand %p2194_p11, %p2188_p12 }
 0x9ca   : > { %2198 = shalt.err (!%p2195_p0)
}
 0x9cb   : > { %s2306_s14 = smov 128   ;;  %s1768_s24 = sshll.u32 %s2633_s29, 3 }
 0x9cc   : > { %1959 = dma.vmem_to_hbm [thread:$0]  (%p2864_p10), %s2711_s15, 512, %s2716_s23, %s1578_s30, %s2306_s14, %s2306_s14, %s2302_s1  }
 0x9cd   : > { %s2865_s1 = sld [smem:[#allocation29_spill]]  ;;  %s2866_s30 = sld [smem:[#allocation30_spill]] }
 0x9ce   : > { %s1814_s17 = sshll.u32 %s2281_s27, 7  ;;  %s624_s16 = scalar_lea.vmem [#allocation11], %s1768_s24 }
 0x9cf   : > { %s1592_s22 = sshll.u32 %s624_s16, 4  ;;  %s2867_s28 = sld [smem:[#allocation31_spill]]  ;;  %s2756_s22 = int_to_ptr.vmem [resolvable:$true] %s1592_s22 }
 0x9d0   : > { %s1573_s21 = scalar_lea.sflag [#allocation7], %s2633_s29  ;;  %s2199_s20 = scalar_lea.vmem %s2756_s22, 128 }
 0x9d1   : > { %p2200_p2 = scmp.ne.s32.totalorder %s2756_s22, %s2199_s20  ;;  %s2307_s27 = smov [#allocation11]  }
 0x9d2   : > { %s2203_s24 = sshll.u32 %s2307_s27, 4  ;;  %s2204_s24 = int_to_ptr.vmem [resolvable:$false] %s2203_s24 }
 0x9d3   : > { %v1810_v8 = vld [vmem:[%s2865_s1] ss:$0 sm:$0xff]  ;;  %p2201_p3 = pnand %p2200_p2, %p2864_p10  ;;  %s2205_s1 = scalar_lea.vmem %s2204_s24, 256 }
 0x9d4   : > { %v1811_v10 = vld [vmem:[%s2866_s30] ss:$0 sm:$0xff]  ;;  %p2206_p6 = scmp.lt.s32.totalorder %s2756_s22, %s2204_s24  ;;  %p2207_p7 = scmp.lt.s32.totalorder %s2205_s1, %s2199_s20 }
 0x9d5   : > { %s2868_s6 = smov %s2867_s28  ;;  %s2754_s14 = scalar_lea.hbm %s2867_s28, %s1814_s17 }
 0x9d6   : > { %p2202_p5 = pneg %p2201_p3  ;;  %p2208_p9 = por %p2207_p7, %p2206_p6 }
 0x9d8   : > { %p2209_p12 = pnand %p2208_p9, %p2202_p5 }
 0xa4b   : > { %v1545_v61 = vpop.xlane.xlu1 %1544 }
 0xa4c   : > { %v1546_v62 = vmul.f32 0.032258064, %v1545_v61 }
 0xa4e   : > { %2083 = vrsqrt.f32 %v1546_v62  ;;  %vm1549_vm11 = vcmp.eq.f32.partialorder %v1546_v62, inf  ;;  %v1552_v2 = vand.u32 2147483648, %v1546_v62  ;;  %vm1551_vm12 = vcmp.eq.f32.partialorder %v1546_v62, 0.0 }
 0xa58   : > { %v2084_v63 = vpop.eup %2083 }
 0xa59   : > { %v1548_v1 = vmul.f32 %v2084_v63, %v1546_v62 }
 0xa5b   : > { %v1550_v3 = vsel %vm1549_vm11, %v1546_v62, %v1548_v1 }
 0xa5c   : > { %v1553_v4 = vsel %vm1551_vm12, %v1552_v2, %v1550_v3 }
 0xa5d   : > { %v1554_v5 = vadd.f32 1e-06, %v1553_v4 }
 0xa5f   : > { %2085 = vrcp.f32 %v1554_v5 }
 0xa69   : > { %v2086_v7 = vpop.eup %2085 }
 0xa6a   : > { %v1556_v9 = vmul.f32 %v2086_v7, %v1541_v58 }
 0xa6c   : > { %v1563_v11 = vmul.f32 %v1810_v8, %v1556_v9 }
 0xa6e   : > { %v1570_v12 = vadd.f32 %v1811_v10, %v1563_v11 }
 0xa70   : > { %1571 = vst.msk [vmem:[%s624_s16] sm:$0xff] %vm673_vm1, %v1570_v12 }
 0xa71   : > { %2212 = shalt.err (!%p2209_p12)
}
 0xa72   : > { %s2213_s29 = scalar_lea.hbm %s2754_s14, 128  ;;  %s2217_s30 = scalar_lea.hbm %s2868_s6, 256 }
 0xa73   : > { %p2214_p4 = scmp.ne.s32.totalorder %s2754_s14, %s2213_s29  ;;  %p2218_p13 = scmp.lt.u32.totalorder %s2754_s14, %s2868_s6 }
 0xa74   : > { %p2219_p11 = scmp.lt.u32.totalorder %s2217_s30, %s2213_s29  ;;  %p2221_p2 = scmp.lt.u32.totalorder %s2213_s29, %s2754_s14 }
 0xa75   : > { %p2215_p1 = pnand %p2214_p4, %p2864_p10 }
 0xa76   : > { %p2220_p0 = por %p2219_p11, %p2218_p13 }
 0xa77   : > { %p2216_p8 = pneg %p2215_p1 }
 0xa78   : > { %p2222_p3 = por %p2221_p2, %p2220_p0 }
 0xa7a   : > { %p2223_p5 = pnand %p2222_p3, %p2216_p8 }
 0xa7c   : > { %2226 = shalt.err (!%p2223_p5)
}
 0xa7d   : > { %1958 = dma.vmem_to_hbm [thread:$0]  (%p2864_p10), %s2756_s22, 128, %s2754_s14, %s1573_s21  }
 0xa7e PF: > { %s2869_s19 = sld [smem:[#allocation21_spill]]  ;;  %s2870_s0 = sld [smem:[#allocation18_spill]] }
 0xa7f   : > { %s2871_s28 = sld [smem:[#allocation24_spill]] }
 0xa84   : > { %p1985_p6 = scmp.ge.s32.totalorder %s2869_s19, 2  ;;  %s1621_s20 = sand.u32 1, %s2870_s0  }
 0xa85   : > { %p2872_p7 = scmp.ne.s32.totalorder %s2871_s28, 0  ;;  %s1622_s27 = scalar_lea.sflag [#allocation7], %s1621_s20 }
 0xa87   : > { %p1973_p9 = pnand %p1985_p6, %p2872_p7 }
 0xa89   : > { %2260 = dma.done.wait (!%p1973_p9), %s1622_s27, 128  }
 0xa8a   : > { %2262 = vsyncadd (!%p1973_p9), %s1622_s27, 4294967168  ;;  %s1631_s24 = scalar_lea.sflag [#allocation13], %s1621_s20 }
 0xa8b   : > { %2264 = dma.done.wait (!%p1973_p9), %s1631_s24, 512  }
 0xa8c   : > { %2266 = vsyncadd (!%p1973_p9), %s1631_s24, 4294966784  ;;  %s36_s29 = sadd.s32 1, %s2869_s19   ;;  %s2873_s26 = sld [smem:[#allocation19_spill]] }
 0xa8d   : > { %p33_p12 = scmp.ge.s32.totalorder %s36_s29, 4   ;;  %s2874_s22 = sld [smem:[#allocation25_spill]] }
 0xa8e   : > { %s2875_s27 = sld [smem:[#allocation20_spill]]  ;;  %s2876_s28 = sld [smem:[#allocation22_spill]] }
 0xa8f   : > { %s2877_s24 = smov %s2273_s25  ;;  %35 = sbr.rel (!%p33_p12) target bundleno = 16 (0x10), region = 159 }
 0xa92   : > { %s2878_s25 = smov %s2873_s26 }
 0xa93   : > { %s2879_s26 = smov %s2874_s22 }
 0xa96   :  { %1636 = vsyncpa [#allocation6], 1 }
 0xa97   :  { %1638 = vsyncpa [#allocation6 + $0x1], 1 }
 0xa98   :  { %1639 = vsyncpa [#allocation9], 1 }
 0xa99   :  { %1640 = vsyncpa [#allocation7], 1 }
 0xa9a   :  { %1642 = vsyncpa [#allocation7 + $0x1], 1 }
 0xa9b   :  { %1643 = vsyncpa [#allocation13], 1 }
 0xa9c   :  { %1645 = vsyncpa [#allocation13 + $0x1], 1 }

</bundles_post_ra>
